<compile_context>
chip_gen: v6e
topology: v6e:2x2x1
jax: 0.10.0
libtpu: 0.0.40
codegen_flags: <defaults>
</compile_context>

<pallas_src>
import math
import numpy as np
import jax
import jax.numpy as jnp
from jax.experimental import pallas as pl
from jax.experimental.pallas import tpu as pltpu

# ---------------- static config (small synthetic sizes) ----------------
N_FEATS    = 32            # n_feats (F)
EDGE_DIM   = 8             # edge_dim
EDGE_DIM_P = 16            # edge_dim padded so bf16 row-concats stay 16-row aligned
N_ITER     = 3             # n_iter
N_NODES    = 16            # total nodes (2 graphs x 8)
N_EDGES    = 32            # total edges (2 graphs x 16 directed ring edges)
N_GRAPHS   = 2
SND        = 6 * N_FEATS   # LinearBlock hidden width in the PyTorch model (192)
SND_P      = 256           # lane-padded hidden width (2 full 128-lane tiles)
ATT_W      = 128           # lane-padded width of the fused GraphConv(F->1) projection
OUT_W      = 128           # lane-dense kernel output width (host slices to F)

F = N_FEATS

# ---- bf16 weight slab row offsets (one [W_ROWS, 256] bf16 input) ----
# all offsets are multiples of 16 (bf16 sublane tile), so slices stay tile-aligned
RW_WUV = 0                      # [F, 2F]       lin_u | lin_v   (pre-scaled by 1/3)
RW_WG  = RW_WUV + F             # [F, F]        lin_gout
RW_ATT = RW_WG + F              # [2F, ATT_W]   col 0: rows 0..F-1 = w_rel, F..2F-1 = w_root
RW_WE  = RW_ATT + 2 * F         # [EDGE_DIM_P, F] lin_edge (pre-scaled by 1/3, rows >= EDGE_DIM zero)
RW_W1  = RW_WE + EDGE_DIM_P     # [F, SND_P]
RW_W2  = RW_W1 + F              # [SND_P, SND_P]
RW_W3  = RW_W2 + SND_P
RW_W4  = RW_W3 + SND_P
RW_W5  = RW_W4 + SND_P          # [SND_P, OUT_W] (only first F cols nonzero)
W_ROWS = RW_W5 + SND_P          # 1200

# ---- f32 vector slab row offsets (one [V_ROWS, 256] f32 input) ----
RV_BN1S, RV_BN1B, RV_B1 = 0, 1, 2
RV_BN2S, RV_BN2B, RV_B2 = 3, 4, 5
RV_BN3S, RV_BN3B, RV_B3 = 6, 7, 8
RV_BN4S, RV_BN4B, RV_B4 = 9, 10, 11
RV_BN5S, RV_BN5B, RV_B5 = 12, 13, 14
RV_BG = 15
RV_AT = 16                      # rows 16..16+N_ITER-1, cols 0..F-1 : attention vector a
RV_SC = RV_AT + N_ITER          # scalars: cols 0..N_ITER-1 = a_bias, col N_ITER = b_rel,
                                #          cols N_ITER+1..N_ITER+4 = PReLU alphas (lin2..lin5)
V_ROWS = 24


# ---------------- single fused kernel ----------------
def dmpnn_fused_kernel(x_ref, eg_ref, A_ref, P_ref, Pt_ref, S_ref, w_ref, v_ref, o_ref):
    bf16 = jnp.bfloat16
    f32 = jnp.float32

    def mm(a_bf, b_bf):
        # bf16 MXU inputs, f32 accumulation.
        return jnp.dot(a_bf, b_bf, preferred_element_type=f32)

    # ---- step 1: initial edge features ----
    # edge_attr = (lin_u(x)[src] + lin_v(x)[dst] + lin_edge(ea)) / 3, /3 folded into
    # wuv / we.  Gathers + edge projection fused into ONE matmul:
    #   eg = [G0 | G1 | ea_pad]  (host-built bf16) against [x@wu ; x@wv ; we].
    x = x_ref[...]                                                   # [N,F] f32
    wuv = w_ref[RW_WUV:RW_WUV + F, 0:2 * F]                          # [F,2F] bf16
    xuv = mm(x.astype(bf16), wuv)                                    # [N,2F] f32
    xu_xv = jnp.concatenate([xuv[:, :F], xuv[:, F:2 * F]], axis=0)   # [2N,F] f32
    we = w_ref[RW_WE:RW_WE + EDGE_DIM_P, 0:F]                        # [EDGE_DIM_P,F] bf16
    wnode = jnp.concatenate([xu_xv.astype(bf16), we], axis=0)        # [2N+EDGE_DIM_P,F] bf16
    edge_attr = mm(eg_ref[...], wnode)                               # [E,F] f32

    # ---- step 2: n_iter message passing + attention over iterations ----
    A = A_ref[...]                                                   # [E,E] bf16 line-graph adjacency
    P = P_ref[...]                                                   # [B,E] bf16 segment one-hot
    Pt_mask = Pt_ref[...].astype(f32) > 0.5                          # [E,B] bool
    watt = w_ref[RW_ATT:RW_ATT + 2 * F, 0:ATT_W]                     # [2F,ATT_W] bf16 (col0 = w_rel;w_root)
    wg = w_ref[RW_WG:RW_WG + F, 0:F]                                 # [F,F] bf16
    bg = v_ref[RV_BG:RV_BG + 1, 0:F]                                 # [1,F] f32
    a_t = v_ref[RV_AT:RV_AT + N_ITER, 0:F]                           # [n_iter,F] f32
    b_rel = v_ref[RV_SC:RV_SC + 1, N_ITER:N_ITER + 1]                # [1,1] f32
    NEG = jnp.float32(-1e30)

    msg = mm(A, edge_attr.astype(bf16))                              # carried A@out (agg / next residual)
    out_list, logit_list = [], []
    for n in range(N_ITER):
        out = edge_attr + msg                                        # [E,F] f32
        out_bf = out.astype(bf16)                                    # cast once, reused
        msg = mm(A, out_bf)                                          # agg now, residual next iter
        msg_bf = msg.astype(bf16)

        # GraphConv(F->1): lin_rel(agg) + lin_root(out) + b_rel as ONE fused matmul
        x_conv = mm(jnp.concatenate([msg_bf, out_bf], axis=1), watt)[:, 0:1] + b_rel   # [E,1]

        # segment softmax (per-segment max shift) fused with the add-pool:
        # numerator P@(out*ex) and denominator P@ex in ONE matmul.
        seg_max = jnp.max(jnp.where(Pt_mask, x_conv, NEG), axis=0, keepdims=True)      # [1,B]
        shift_e = jnp.sum(jnp.where(Pt_mask, seg_max, 0.0), axis=1, keepdims=True)     # [E,1]
        ex = jnp.exp(x_conv - shift_e)                                                 # [E,1]
        pool = mm(P, jnp.concatenate([out * ex, ex], axis=1).astype(bf16))             # [B,F+1]
        gout = pool[:, :F] * pl.reciprocal(pool[:, F:F + 1], approx=True)              # [B,F]
        # TODO(synk): guard empty segments (den==0) before reciprocal once batching pads graphs.

        gt = jnp.tanh(mm(gout.astype(bf16), wg) + bg)                                  # [B,F]
        logit_list.append(jnp.sum(gt * a_t[n:n + 1, :], axis=1, keepdims=True))        # [B,1]
        out_list.append(out)

    # softmax over the n_iter axis, then weight each iteration's edge states
    logits = jnp.concatenate(logit_list, axis=1) + v_ref[RV_SC:RV_SC + 1, 0:N_ITER]    # [B,n_iter]
    le = jnp.exp(logits - jnp.max(logits, axis=1, keepdims=True))
    attn = le * pl.reciprocal(jnp.sum(le, axis=1, keepdims=True), approx=True)         # [B,n_iter]
    attn_e = mm(Pt_ref[...], attn.astype(bf16))                                        # [E,n_iter]
    out_w = out_list[0] * attn_e[:, 0:1]
    for n in range(1, N_ITER):
        out_w = out_w + out_list[n] * attn_e[:, n:n + 1]                               # [E,F]

    # ---- step 3: scatter to nodes + LinearBlock (hidden padded 192 -> 256) ----
    xin = x + mm(S_ref[...], out_w.astype(bf16))                     # [N,F] f32

    def bn(v, rs, rb, width):
        return v * v_ref[rs:rs + 1, 0:width] + v_ref[rb:rb + 1, 0:width]

    def prelu(v, col):
        alpha = v_ref[RV_SC:RV_SC + 1, col:col + 1]                  # [1,1]
        return jnp.where(v >= 0, v, alpha * v)

    def lin(v_bf, rw, kdim, ndim, rb):
        return mm(v_bf, w_ref[rw:rw + kdim, 0:ndim]) + v_ref[rb:rb + 1, 0:ndim]

    h = lin(bn(xin, RV_BN1S, RV_BN1B, F).astype(bf16), RW_W1, F, SND_P, RV_B1)                           # lin1
    t = lin(prelu(bn(h, RV_BN2S, RV_BN2B, SND_P), N_ITER + 1).astype(bf16), RW_W2, SND_P, SND_P, RV_B2)  # lin2
    t = lin(prelu(bn(t, RV_BN3S, RV_BN3B, SND_P), N_ITER + 2).astype(bf16), RW_W3, SND_P, SND_P, RV_B3)  # lin3
    h = (t + h) * 0.5
    t = lin(prelu(bn(h, RV_BN4S, RV_BN4B, SND_P), N_ITER + 3).astype(bf16), RW_W4, SND_P, SND_P, RV_B4)  # lin4
    h = (t + h) * 0.5
    # lin5: lane-dense [N, OUT_W] store; only the first F lanes are meaningful (rest exact zeros).
    o_ref[...] = lin(prelu(bn(h, RV_BN5S, RV_BN5B, SND_P), N_ITER + 4).astype(bf16),
                     RW_W5, SND_P, OUT_W, RV_B5)


# ---------------- wrapper ----------------
def _full(arr):
    nd = arr.ndim
    return pl.BlockSpec(arr.shape, lambda i, nd=nd: (0,) * nd)


def dmpnn_forward(x, eg, A, P, Pt, S, wslab, vslab):
    ins = (x, eg, A, P, Pt, S, wslab, vslab)
    out = pl.pallas_call(
        dmpnn_fused_kernel,
        out_shape=jax.ShapeDtypeStruct((N_NODES, OUT_W), jnp.float32),
        grid=(1,),
        in_specs=[_full(a) for a in ins],
        out_specs=pl.BlockSpec((N_NODES, OUT_W), lambda i: (0, 0)),
        compiler_params=pltpu.CompilerParams(dimension_semantics=("arbitrary",)),
    )(*ins)
    return out[:, :N_FEATS]


# ---------------- parameter / data setup ----------------
def _bn_scale_shift(dim):
    # PyTorch BatchNorm1d defaults (inference mode): gamma=1, beta=0, mean=0, var=1
    gamma = np.ones((dim,), np.float32)
    beta = np.zeros((dim,), np.float32)
    mean = np.zeros((dim,), np.float32)
    var = np.ones((dim,), np.float32)
    scale = gamma / np.sqrt(var + 1e-5)
    shift = beta - mean * scale
    return scale, shift


if __name__ == "__main__":
    key = jax.random.PRNGKey(0)
    ks = list(jax.random.split(key, 24))

    def nrm(k, shape, s=0.1):
        return np.asarray(jax.random.normal(k, shape), np.float32) * s

    # --- synthetic batched graph: 2 directed-ring graphs of 8 nodes / 16 edges each ---
    src_l, dst_l, batch_l = [], [], []
    for g in range(N_GRAPHS):
        off = g * 8
        for i in range(8):
            src_l += [off + i, off + (i + 1) % 8]
            dst_l += [off + (i + 1) % 8, off + i]
            batch_l += [g, g]
    src = np.array(src_l)
    dst = np.array(dst_l)
    ebatch = np.array(batch_l)
    assert src.shape[0] == N_EDGES

    # dense one-hot operators (demo size only; 0/1 values are exact in bf16)
    G0 = (src[:, None] == np.arange(N_NODES)[None, :]).astype(np.float32)            # [E,N]
    G1 = (dst[:, None] == np.arange(N_NODES)[None, :]).astype(np.float32)            # [E,N]
    # line-graph adjacency A[k,i]=1 iff dst(i)==src(k) and edge i is not the reverse of k
    A_np = ((dst[None, :] == src[:, None]) &
            ~(src[None, :] == dst[:, None])).astype(np.float32)                      # [E,E]
    P_np = (ebatch[None, :] == np.arange(N_GRAPHS)[:, None]).astype(np.float32)      # [B,E]

    # --- inputs (data.x, data.edge_attr) ---
    x_nodes = nrm(ks[19], (N_NODES, N_FEATS), s=1.0)
    edge_attr_in = nrm(ks[20], (N_EDGES, EDGE_DIM), s=1.0)

    # fused edge-side operator: [G0 | G1 | edge_attr zero-padded to EDGE_DIM_P]
    ea_pad = np.zeros((N_EDGES, EDGE_DIM_P), np.float32)
    ea_pad[:, :EDGE_DIM] = edge_attr_in
    eg_np = np.concatenate([G0, G1, ea_pad], axis=1)                                 # [E, 2N+EDGE_DIM_P]

    bf16 = jnp.bfloat16
    x = jnp.asarray(x_nodes)
    eg = jnp.asarray(eg_np).astype(bf16)
    A = jnp.asarray(A_np).astype(bf16)
    P = jnp.asarray(P_np).astype(bf16)
    Pt = jnp.asarray(P_np.T).astype(bf16)
    S = jnp.asarray(G1.T).astype(bf16)

    # --- raw parameters (weights stored pre-transposed as [in, out]) ---
    wu = nrm(ks[0], (N_FEATS, N_FEATS))
    wv = nrm(ks[1], (N_FEATS, N_FEATS))
    we = nrm(ks[2], (EDGE_DIM, N_FEATS))
    w_rel = nrm(ks[3], (N_FEATS,))
    b_rel = float(nrm(ks[4], (1,))[0])
    w_root = nrm(ks[5], (N_FEATS,))
    wg = nrm(ks[6], (N_FEATS, N_FEATS))
    bg = nrm(ks[7], (N_FEATS,))
    glorot_bound = math.sqrt(6.0 / (N_FEATS + N_ITER))
    a_t = np.asarray(jax.random.uniform(ks[8], (N_ITER, N_FEATS), jnp.float32,
                                        minval=-glorot_bound, maxval=glorot_bound))
    w1 = nrm(ks[9], (N_FEATS, SND));  b1 = nrm(ks[10], (SND,))
    w2 = nrm(ks[11], (SND, SND));     b2 = nrm(ks[12], (SND,))
    w3 = nrm(ks[13], (SND, SND));     b3 = nrm(ks[14], (SND,))
    w4 = nrm(ks[15], (SND, SND));     b4 = nrm(ks[16], (SND,))
    w5 = nrm(ks[17], (SND, N_FEATS)); b5 = nrm(ks[18], (N_FEATS,))

    # --- ONE bf16 weight slab (all dense matmul weights) ---
    wslab = np.zeros((W_ROWS, 256), np.float32)
    wslab[RW_WUV:RW_WUV + F, 0:F]        = wu / 3.0          # /3 folded in
    wslab[RW_WUV:RW_WUV + F, F:2 * F]    = wv / 3.0
    wslab[RW_WG:RW_WG + F, 0:F]          = wg
    wslab[RW_ATT:RW_ATT + F, 0]          = w_rel             # fused GraphConv projection
    wslab[RW_ATT + F:RW_ATT + 2 * F, 0]  = w_root
    wslab[RW_WE:RW_WE + EDGE_DIM, 0:F]   = we / 3.0
    wslab[RW_W1:RW_W1 + F, 0:SND]        = w1                # LinearBlock, zero-padded 192 -> 256 (exact)
    wslab[RW_W2:RW_W2 + SND, 0:SND]      = w2
    wslab[RW_W3:RW_W3 + SND, 0:SND]      = w3
    wslab[RW_W4:RW_W4 + SND, 0:SND]      = w4
    wslab[RW_W5:RW_W5 + SND, 0:F]        = w5
    wslab = jnp.asarray(wslab).astype(bf16)

    # --- ONE f32 vector slab (BN scale/shift, biases, a, a_bias, b_rel, PReLU alphas) ---
    vslab = np.zeros((V_ROWS, 256), np.float32)
    s_, b_ = _bn_scale_shift(F);   vslab[RV_BN1S, 0:F] = s_;   vslab[RV_BN1B, 0:F] = b_
    s_, b_ = _bn_scale_shift(SND); vslab[RV_BN2S, 0:SND] = s_; vslab[RV_BN2B, 0:SND] = b_
    s_, b_ = _bn_scale_shift(SND); vslab[RV_BN3S, 0:SND] = s_; vslab[RV_BN3B, 0:SND] = b_
    s_, b_ = _bn_scale_shift(SND); vslab[RV_BN4S, 0:SND] = s_; vslab[RV_BN4B, 0:SND] = b_
    s_, b_ = _bn_scale_shift(SND); vslab[RV_BN5S, 0:SND] = s_; vslab[RV_BN5B, 0:SND] = b_
    vslab[RV_B1, 0:SND] = b1
    vslab[RV_B2, 0:SND] = b2
    vslab[RV_B3, 0:SND] = b3
    vslab[RV_B4, 0:SND] = b4
    vslab[RV_B5, 0:F]   = b5
    vslab[RV_BG, 0:F]   = bg
    vslab[RV_AT:RV_AT + N_ITER, 0:F] = a_t
    vslab[RV_SC, 0:N_ITER] = 0.0                     # a_bias (PyTorch init: zeros)
    vslab[RV_SC, N_ITER]   = b_rel                   # GraphConv bias
    vslab[RV_SC, N_ITER + 1:N_ITER + 5] = 0.25       # PReLU alphas (PyTorch default)
    vslab = jnp.asarray(vslab)

    fwd = jax.jit(dmpnn_forward)
    out = fwd(x, eg, A, P, Pt, S, wslab, vslab)
    out = jax.block_until_ready(out)

    assert out.shape == (N_NODES, N_FEATS)
    assert bool(jnp.all(jnp.isfinite(out)))
    print("KERNEL_OK")
</pallas_src>

<mosaic_0001>
module attributes {stable_mosaic.version = 11 : i64} {
  func.func @dmpnn_fused_kernel(%arg0: i32, %arg1: memref<16x32xf32, #tpu.memory_space<vmem>>, %arg2: memref<32x48xbf16, #tpu.memory_space<vmem>>, %arg3: memref<32x32xbf16, #tpu.memory_space<vmem>>, %arg4: memref<2x32xbf16, #tpu.memory_space<vmem>>, %arg5: memref<32x2xbf16, #tpu.memory_space<vmem>>, %arg6: memref<16x32xbf16, #tpu.memory_space<vmem>>, %arg7: memref<1200x256xbf16, #tpu.memory_space<vmem>>, %arg8: memref<24x256xf32, #tpu.memory_space<vmem>>, %arg9: memref<16x128xf32, #tpu.memory_space<vmem>>) attributes {dimension_semantics = [#tpu.dimension_semantics<arbitrary>], iteration_bounds = array<i64: 1>, scalar_prefetch = 0 : i64, scratch_operands = 0 : i64, tpu.core_type = #tpu.core_type<tc>, window_params = [{pipeline_mode = #tpu.pipeline_mode<synchronous>, transform_indices = @transform_0, window_bounds = array<i64: 16, 32>}, {pipeline_mode = #tpu.pipeline_mode<synchronous>, transform_indices = @transform_1, window_bounds = array<i64: 32, 48>}, {pipeline_mode = #tpu.pipeline_mode<synchronous>, transform_indices = @transform_2, window_bounds = array<i64: 32, 32>}, {pipeline_mode = #tpu.pipeline_mode<synchronous>, transform_indices = @transform_3, window_bounds = array<i64: 2, 32>}, {pipeline_mode = #tpu.pipeline_mode<synchronous>, transform_indices = @transform_4, window_bounds = array<i64: 32, 2>}, {pipeline_mode = #tpu.pipeline_mode<synchronous>, transform_indices = @transform_5, window_bounds = array<i64: 16, 32>}, {pipeline_mode = #tpu.pipeline_mode<synchronous>, transform_indices = @transform_6, window_bounds = array<i64: 1200, 256>}, {pipeline_mode = #tpu.pipeline_mode<synchronous>, transform_indices = @transform_7, window_bounds = array<i64: 24, 256>}, {pipeline_mode = #tpu.pipeline_mode<synchronous>, transform_indices = @transform_8, window_bounds = array<i64: 16, 128>}]} {
    %c0 = arith.constant 0 : index
    %c0_0 = arith.constant 0 : index
    %0 = vector.load %arg1[%c0, %c0_0] : memref<16x32xf32, #tpu.memory_space<vmem>>, vector<16x32xf32>
    %c0_1 = arith.constant 0 : index
    %c0_2 = arith.constant 0 : index
    %1 = vector.load %arg7[%c0_1, %c0_2] : memref<1200x256xbf16, #tpu.memory_space<vmem>>, vector<32x64xbf16>
    %2 = arith.truncf %0 : vector<16x32xf32> to vector<16x32xbf16>
    %cst = arith.constant dense<0.000000e+00> : vector<16x64xf32>
    %3 = tpu.matmul %2, %1, %cst {dimension_numbers = #tpu.dot_dimension_numbers<[1], [0], [0], [1], [0, 0, 1, 1], [], []>} : vector<16x32xbf16>, vector<32x64xbf16>, vector<16x64xf32> -> vector<16x64xf32>
    %4 = vector.extract_strided_slice %3 {offsets = [0, 0], sizes = [16, 32], strides = [1, 1]} : vector<16x64xf32> to vector<16x32xf32>
    %5 = vector.extract_strided_slice %3 {offsets = [0, 32], sizes = [16, 32], strides = [1, 1]} : vector<16x64xf32> to vector<16x32xf32>
    %6 = tpu.concatenate %4, %5 in 0 : vector<16x32xf32>, vector<16x32xf32> -> vector<32x32xf32>
    %c128 = arith.constant 128 : index
    %c0_3 = arith.constant 0 : index
    %7 = vector.load %arg7[%c128, %c0_3] : memref<1200x256xbf16, #tpu.memory_space<vmem>>, vector<16x32xbf16>
    %8 = arith.truncf %6 : vector<32x32xf32> to vector<32x32xbf16>
    %9 = tpu.concatenate %8, %7 in 0 : vector<32x32xbf16>, vector<16x32xbf16> -> vector<48x32xbf16>
    %c0_4 = arith.constant 0 : index
    %c0_5 = arith.constant 0 : index
    %10 = vector.load %arg2[%c0_4, %c0_5] : memref<32x48xbf16, #tpu.memory_space<vmem>>, vector<32x48xbf16>
    %cst_6 = arith.constant dense<0.000000e+00> : vector<32x32xf32>
    %11 = tpu.matmul %10, %9, %cst_6 {dimension_numbers = #tpu.dot_dimension_numbers<[1], [0], [0], [1], [0, 0, 1, 1], [], []>} : vector<32x48xbf16>, vector<48x32xbf16>, vector<32x32xf32> -> vector<32x32xf32>
    %c0_7 = arith.constant 0 : index
    %c0_8 = arith.constant 0 : index
    %12 = vector.load %arg3[%c0_7, %c0_8] : memref<32x32xbf16, #tpu.memory_space<vmem>>, vector<32x32xbf16>
    %c0_9 = arith.constant 0 : index
    %c0_10 = arith.constant 0 : index
    %13 = vector.load %arg4[%c0_9, %c0_10] : memref<2x32xbf16, #tpu.memory_space<vmem>>, vector<2x32xbf16>
    %c0_11 = arith.constant 0 : index
    %c0_12 = arith.constant 0 : index
    %14 = vector.load %arg5[%c0_11, %c0_12] : memref<32x2xbf16, #tpu.memory_space<vmem>>, vector<32x2xbf16>
    %15 = arith.extf %14 : vector<32x2xbf16> to vector<32x2xf32>
    %cst_13 = arith.constant 5.000000e-01 : f32
    %16 = vector.broadcast %cst_13 : f32 to vector<32x2xf32>
    %17 = arith.cmpf ogt, %15, %16 : vector<32x2xf32>
    %c64 = arith.constant 64 : index
    %c0_14 = arith.constant 0 : index
    %18 = vector.load %arg7[%c64, %c0_14] : memref<1200x256xbf16, #tpu.memory_space<vmem>>, vector<64x128xbf16>
    %c32 = arith.constant 32 : index
    %c0_15 = arith.constant 0 : index
    %19 = vector.load %arg7[%c32, %c0_15] : memref<1200x256xbf16, #tpu.memory_space<vmem>>, vector<32x32xbf16>
    %c15 = arith.constant 15 : index
    %c0_16 = arith.constant 0 : index
    %20 = vector.load %arg8[%c15, %c0_16] : memref<24x256xf32, #tpu.memory_space<vmem>>, vector<1x32xf32>
    %c16 = arith.constant 16 : index
    %c0_17 = arith.constant 0 : index
    %21 = vector.load %arg8[%c16, %c0_17] : memref<24x256xf32, #tpu.memory_space<vmem>>, vector<3x32xf32>
    %c19 = arith.constant 19 : index
    %c3 = arith.constant 3 : index
    %22 = vector.load %arg8[%c19, %c3] : memref<24x256xf32, #tpu.memory_space<vmem>>, vector<1x1xf32>
    %23 = arith.truncf %11 : vector<32x32xf32> to vector<32x32xbf16>
    %cst_18 = arith.constant dense<0.000000e+00> : vector<32x32xf32>
    %24 = tpu.matmul %12, %23, %cst_18 {dimension_numbers = #tpu.dot_dimension_numbers<[1], [0], [0], [1], [0, 0, 1, 1], [], []>} : vector<32x32xbf16>, vector<32x32xbf16>, vector<32x32xf32> -> vector<32x32xf32>
    %25 = arith.addf %11, %24 : vector<32x32xf32>
    %26 = arith.truncf %25 : vector<32x32xf32> to vector<32x32xbf16>
    %cst_19 = arith.constant dense<0.000000e+00> : vector<32x32xf32>
    %27 = tpu.matmul %12, %26, %cst_19 {dimension_numbers = #tpu.dot_dimension_numbers<[1], [0], [0], [1], [0, 0, 1, 1], [], []>} : vector<32x32xbf16>, vector<32x32xbf16>, vector<32x32xf32> -> vector<32x32xf32>
    %28 = arith.truncf %27 : vector<32x32xf32> to vector<32x32xbf16>
    %29 = tpu.concatenate %28, %26 in 1 : vector<32x32xbf16>, vector<32x32xbf16> -> vector<32x64xbf16>
    %cst_20 = arith.constant dense<0.000000e+00> : vector<32x128xf32>
    %30 = tpu.matmul %29, %18, %cst_20 {dimension_numbers = #tpu.dot_dimension_numbers<[1], [0], [0], [1], [0, 0, 1, 1], [], []>} : vector<32x64xbf16>, vector<64x128xbf16>, vector<32x128xf32> -> vector<32x128xf32>
    %31 = vector.extract_strided_slice %30 {offsets = [0, 0], sizes = [32, 1], strides = [1, 1]} : vector<32x128xf32> to vector<32x1xf32>
    %32 = vector.broadcast %22 : vector<1x1xf32> to vector<32x1xf32>
    %33 = arith.addf %31, %32 : vector<32x1xf32>
    %cst_21 = arith.constant -1.000000e+30 : f32
    %34 = vector.shape_cast %33 : vector<32x1xf32> to vector<32x1xf32>
    %35 = vector.broadcast %34 : vector<32x1xf32> to vector<32x2xf32>
    %36 = vector.broadcast %cst_21 : f32 to vector<32x2xf32>
    %37 = arith.select %17, %35, %36 : vector<32x2xi1>, vector<32x2xf32>
    %cst_22 = arith.constant dense<0xFF800000> : vector<2xf32>
    %38 = vector.multi_reduction <maximumf>, %37, %cst_22 [0] : vector<32x2xf32> to vector<2xf32>
    %39 = vector.shape_cast %38 : vector<2xf32> to vector<1x2xf32>
    %cst_23 = arith.constant 0.000000e+00 : f32
    %40 = vector.shape_cast %39 : vector<1x2xf32> to vector<1x2xf32>
    %41 = vector.broadcast %40 : vector<1x2xf32> to vector<32x2xf32>
    %42 = vector.broadcast %cst_23 : f32 to vector<32x2xf32>
    %43 = arith.select %17, %41, %42 : vector<32x2xi1>, vector<32x2xf32>
    %cst_24 = arith.constant dense<0.000000e+00> : vector<32xf32>
    %44 = vector.multi_reduction <add>, %43, %cst_24 [1] : vector<32x2xf32> to vector<32xf32>
    %45 = vector.shape_cast %44 : vector<32xf32> to vector<32x1xf32>
    %46 = arith.subf %33, %45 : vector<32x1xf32>
    %47 = math.exp %46 : vector<32x1xf32>
    %48 = vector.broadcast %47 : vector<32x1xf32> to vector<32x32xf32>
    %49 = arith.mulf %25, %48 : vector<32x32xf32>
    %50 = tpu.concatenate %49, %47 in 1 : vector<32x32xf32>, vector<32x1xf32> -> vector<32x33xf32>
    %51 = arith.truncf %50 : vector<32x33xf32> to vector<32x33xbf16>
    %cst_25 = arith.constant dense<0.000000e+00> : vector<2x33xf32>
    %52 = tpu.matmul %13, %51, %cst_25 {dimension_numbers = #tpu.dot_dimension_numbers<[1], [0], [0], [1], [0, 0, 1, 1], [], []>} : vector<2x32xbf16>, vector<32x33xbf16>, vector<2x33xf32> -> vector<2x33xf32>
    %53 = vector.extract_strided_slice %52 {offsets = [0, 0], sizes = [2, 32], strides = [1, 1]} : vector<2x33xf32> to vector<2x32xf32>
    %54 = vector.extract_strided_slice %52 {offsets = [0, 32], sizes = [2, 1], strides = [1, 1]} : vector<2x33xf32> to vector<2x1xf32>
    %55 = tpu.reciprocal %54 {approx = true} : vector<2x1xf32> -> vector<2x1xf32>
    %56 = vector.broadcast %55 : vector<2x1xf32> to vector<2x32xf32>
    %57 = arith.mulf %53, %56 : vector<2x32xf32>
    %58 = arith.truncf %57 : vector<2x32xf32> to vector<2x32xbf16>
    %cst_26 = arith.constant dense<0.000000e+00> : vector<2x32xf32>
    %59 = tpu.matmul %58, %19, %cst_26 {dimension_numbers = #tpu.dot_dimension_numbers<[1], [0], [0], [1], [0, 0, 1, 1], [], []>} : vector<2x32xbf16>, vector<32x32xbf16>, vector<2x32xf32> -> vector<2x32xf32>
    %60 = vector.broadcast %20 : vector<1x32xf32> to vector<2x32xf32>
    %61 = arith.addf %59, %60 : vector<2x32xf32>
    %62 = math.tanh %61 : vector<2x32xf32>
    %63 = vector.extract_strided_slice %21 {offsets = [0, 0], sizes = [1, 32], strides = [1, 1]} : vector<3x32xf32> to vector<1x32xf32>
    %64 = vector.broadcast %63 : vector<1x32xf32> to vector<2x32xf32>
    %65 = arith.mulf %62, %64 : vector<2x32xf32>
    %cst_27 = arith.constant dense<0.000000e+00> : vector<2xf32>
    %66 = vector.multi_reduction <add>, %65, %cst_27 [1] : vector<2x32xf32> to vector<2xf32>
    %67 = vector.shape_cast %66 : vector<2xf32> to vector<2x1xf32>
    %68 = arith.addf %11, %27 : vector<32x32xf32>
    %69 = arith.truncf %68 : vector<32x32xf32> to vector<32x32xbf16>
    %cst_28 = arith.constant dense<0.000000e+00> : vector<32x32xf32>
    %70 = tpu.matmul %12, %69, %cst_28 {dimension_numbers = #tpu.dot_dimension_numbers<[1], [0], [0], [1], [0, 0, 1, 1], [], []>} : vector<32x32xbf16>, vector<32x32xbf16>, vector<32x32xf32> -> vector<32x32xf32>
    %71 = arith.truncf %70 : vector<32x32xf32> to vector<32x32xbf16>
    %72 = tpu.concatenate %71, %69 in 1 : vector<32x32xbf16>, vector<32x32xbf16> -> vector<32x64xbf16>
    %cst_29 = arith.constant dense<0.000000e+00> : vector<32x128xf32>
    %73 = tpu.matmul %72, %18, %cst_29 {dimension_numbers = #tpu.dot_dimension_numbers<[1], [0], [0], [1], [0, 0, 1, 1], [], []>} : vector<32x64xbf16>, vector<64x128xbf16>, vector<32x128xf32> -> vector<32x128xf32>
    %74 = vector.extract_strided_slice %73 {offsets = [0, 0], sizes = [32, 1], strides = [1, 1]} : vector<32x128xf32> to vector<32x1xf32>
    %75 = vector.broadcast %22 : vector<1x1xf32> to vector<32x1xf32>
    %76 = arith.addf %74, %75 : vector<32x1xf32>
    %cst_30 = arith.constant -1.000000e+30 : f32
    %77 = vector.shape_cast %76 : vector<32x1xf32> to vector<32x1xf32>
    %78 = vector.broadcast %77 : vector<32x1xf32> to vector<32x2xf32>
    %79 = vector.broadcast %cst_30 : f32 to vector<32x2xf32>
    %80 = arith.select %17, %78, %79 : vector<32x2xi1>, vector<32x2xf32>
    %cst_31 = arith.constant dense<0xFF800000> : vector<2xf32>
    %81 = vector.multi_reduction <maximumf>, %80, %cst_31 [0] : vector<32x2xf32> to vector<2xf32>
    %82 = vector.shape_cast %81 : vector<2xf32> to vector<1x2xf32>
    %cst_32 = arith.constant 0.000000e+00 : f32
    %83 = vector.shape_cast %82 : vector<1x2xf32> to vector<1x2xf32>
    %84 = vector.broadcast %83 : vector<1x2xf32> to vector<32x2xf32>
    %85 = vector.broadcast %cst_32 : f32 to vector<32x2xf32>
    %86 = arith.select %17, %84, %85 : vector<32x2xi1>, vector<32x2xf32>
    %cst_33 = arith.constant dense<0.000000e+00> : vector<32xf32>
    %87 = vector.multi_reduction <add>, %86, %cst_33 [1] : vector<32x2xf32> to vector<32xf32>
    %88 = vector.shape_cast %87 : vector<32xf32> to vector<32x1xf32>
    %89 = arith.subf %76, %88 : vector<32x1xf32>
    %90 = math.exp %89 : vector<32x1xf32>
    %91 = vector.broadcast %90 : vector<32x1xf32> to vector<32x32xf32>
    %92 = arith.mulf %68, %91 : vector<32x32xf32>
    %93 = tpu.concatenate %92, %90 in 1 : vector<32x32xf32>, vector<32x1xf32> -> vector<32x33xf32>
    %94 = arith.truncf %93 : vector<32x33xf32> to vector<32x33xbf16>
    %cst_34 = arith.constant dense<0.000000e+00> : vector<2x33xf32>
    %95 = tpu.matmul %13, %94, %cst_34 {dimension_numbers = #tpu.dot_dimension_numbers<[1], [0], [0], [1], [0, 0, 1, 1], [], []>} : vector<2x32xbf16>, vector<32x33xbf16>, vector<2x33xf32> -> vector<2x33xf32>
    %96 = vector.extract_strided_slice %95 {offsets = [0, 0], sizes = [2, 32], strides = [1, 1]} : vector<2x33xf32> to vector<2x32xf32>
    %97 = vector.extract_strided_slice %95 {offsets = [0, 32], sizes = [2, 1], strides = [1, 1]} : vector<2x33xf32> to vector<2x1xf32>
    %98 = tpu.reciprocal %97 {approx = true} : vector<2x1xf32> -> vector<2x1xf32>
    %99 = vector.broadcast %98 : vector<2x1xf32> to vector<2x32xf32>
    %100 = arith.mulf %96, %99 : vector<2x32xf32>
    %101 = arith.truncf %100 : vector<2x32xf32> to vector<2x32xbf16>
    %cst_35 = arith.constant dense<0.000000e+00> : vector<2x32xf32>
    %102 = tpu.matmul %101, %19, %cst_35 {dimension_numbers = #tpu.dot_dimension_numbers<[1], [0], [0], [1], [0, 0, 1, 1], [], []>} : vector<2x32xbf16>, vector<32x32xbf16>, vector<2x32xf32> -> vector<2x32xf32>
    %103 = vector.broadcast %20 : vector<1x32xf32> to vector<2x32xf32>
    %104 = arith.addf %102, %103 : vector<2x32xf32>
    %105 = math.tanh %104 : vector<2x32xf32>
    %106 = vector.extract_strided_slice %21 {offsets = [1, 0], sizes = [1, 32], strides = [1, 1]} : vector<3x32xf32> to vector<1x32xf32>
    %107 = vector.broadcast %106 : vector<1x32xf32> to vector<2x32xf32>
    %108 = arith.mulf %105, %107 : vector<2x32xf32>
    %cst_36 = arith.constant dense<0.000000e+00> : vector<2xf32>
    %109 = vector.multi_reduction <add>, %108, %cst_36 [1] : vector<2x32xf32> to vector<2xf32>
    %110 = vector.shape_cast %109 : vector<2xf32> to vector<2x1xf32>
    %111 = arith.addf %11, %70 : vector<32x32xf32>
    %112 = arith.truncf %111 : vector<32x32xf32> to vector<32x32xbf16>
    %cst_37 = arith.constant dense<0.000000e+00> : vector<32x32xf32>
    %113 = tpu.matmul %12, %112, %cst_37 {dimension_numbers = #tpu.dot_dimension_numbers<[1], [0], [0], [1], [0, 0, 1, 1], [], []>} : vector<32x32xbf16>, vector<32x32xbf16>, vector<32x32xf32> -> vector<32x32xf32>
    %114 = arith.truncf %113 : vector<32x32xf32> to vector<32x32xbf16>
    %115 = tpu.concatenate %114, %112 in 1 : vector<32x32xbf16>, vector<32x32xbf16> -> vector<32x64xbf16>
    %cst_38 = arith.constant dense<0.000000e+00> : vector<32x128xf32>
    %116 = tpu.matmul %115, %18, %cst_38 {dimension_numbers = #tpu.dot_dimension_numbers<[1], [0], [0], [1], [0, 0, 1, 1], [], []>} : vector<32x64xbf16>, vector<64x128xbf16>, vector<32x128xf32> -> vector<32x128xf32>
    %117 = vector.extract_strided_slice %116 {offsets = [0, 0], sizes = [32, 1], strides = [1, 1]} : vector<32x128xf32> to vector<32x1xf32>
    %118 = vector.broadcast %22 : vector<1x1xf32> to vector<32x1xf32>
    %119 = arith.addf %117, %118 : vector<32x1xf32>
    %cst_39 = arith.constant -1.000000e+30 : f32
    %120 = vector.shape_cast %119 : vector<32x1xf32> to vector<32x1xf32>
    %121 = vector.broadcast %120 : vector<32x1xf32> to vector<32x2xf32>
    %122 = vector.broadcast %cst_39 : f32 to vector<32x2xf32>
    %123 = arith.select %17, %121, %122 : vector<32x2xi1>, vector<32x2xf32>
    %cst_40 = arith.constant dense<0xFF800000> : vector<2xf32>
    %124 = vector.multi_reduction <maximumf>, %123, %cst_40 [0] : vector<32x2xf32> to vector<2xf32>
    %125 = vector.shape_cast %124 : vector<2xf32> to vector<1x2xf32>
    %cst_41 = arith.constant 0.000000e+00 : f32
    %126 = vector.shape_cast %125 : vector<1x2xf32> to vector<1x2xf32>
    %127 = vector.broadcast %126 : vector<1x2xf32> to vector<32x2xf32>
    %128 = vector.broadcast %cst_41 : f32 to vector<32x2xf32>
    %129 = arith.select %17, %127, %128 : vector<32x2xi1>, vector<32x2xf32>
    %cst_42 = arith.constant dense<0.000000e+00> : vector<32xf32>
    %130 = vector.multi_reduction <add>, %129, %cst_42 [1] : vector<32x2xf32> to vector<32xf32>
    %131 = vector.shape_cast %130 : vector<32xf32> to vector<32x1xf32>
    %132 = arith.subf %119, %131 : vector<32x1xf32>
    %133 = math.exp %132 : vector<32x1xf32>
    %134 = vector.broadcast %133 : vector<32x1xf32> to vector<32x32xf32>
    %135 = arith.mulf %111, %134 : vector<32x32xf32>
    %136 = tpu.concatenate %135, %133 in 1 : vector<32x32xf32>, vector<32x1xf32> -> vector<32x33xf32>
    %137 = arith.truncf %136 : vector<32x33xf32> to vector<32x33xbf16>
    %cst_43 = arith.constant dense<0.000000e+00> : vector<2x33xf32>
    %138 = tpu.matmul %13, %137, %cst_43 {dimension_numbers = #tpu.dot_dimension_numbers<[1], [0], [0], [1], [0, 0, 1, 1], [], []>} : vector<2x32xbf16>, vector<32x33xbf16>, vector<2x33xf32> -> vector<2x33xf32>
    %139 = vector.extract_strided_slice %138 {offsets = [0, 0], sizes = [2, 32], strides = [1, 1]} : vector<2x33xf32> to vector<2x32xf32>
    %140 = vector.extract_strided_slice %138 {offsets = [0, 32], sizes = [2, 1], strides = [1, 1]} : vector<2x33xf32> to vector<2x1xf32>
    %141 = tpu.reciprocal %140 {approx = true} : vector<2x1xf32> -> vector<2x1xf32>
    %142 = vector.broadcast %141 : vector<2x1xf32> to vector<2x32xf32>
    %143 = arith.mulf %139, %142 : vector<2x32xf32>
    %144 = arith.truncf %143 : vector<2x32xf32> to vector<2x32xbf16>
    %cst_44 = arith.constant dense<0.000000e+00> : vector<2x32xf32>
    %145 = tpu.matmul %144, %19, %cst_44 {dimension_numbers = #tpu.dot_dimension_numbers<[1], [0], [0], [1], [0, 0, 1, 1], [], []>} : vector<2x32xbf16>, vector<32x32xbf16>, vector<2x32xf32> -> vector<2x32xf32>
    %146 = vector.broadcast %20 : vector<1x32xf32> to vector<2x32xf32>
    %147 = arith.addf %145, %146 : vector<2x32xf32>
    %148 = math.tanh %147 : vector<2x32xf32>
    %149 = vector.extract_strided_slice %21 {offsets = [2, 0], sizes = [1, 32], strides = [1, 1]} : vector<3x32xf32> to vector<1x32xf32>
    %150 = vector.broadcast %149 : vector<1x32xf32> to vector<2x32xf32>
    %151 = arith.mulf %148, %150 : vector<2x32xf32>
    %cst_45 = arith.constant dense<0.000000e+00> : vector<2xf32>
    %152 = vector.multi_reduction <add>, %151, %cst_45 [1] : vector<2x32xf32> to vector<2xf32>
    %153 = vector.shape_cast %152 : vector<2xf32> to vector<2x1xf32>
    %154 = tpu.concatenate %67, %110, %153 in 1 : vector<2x1xf32>, vector<2x1xf32>, vector<2x1xf32> -> vector<2x3xf32>
    %c19_46 = arith.constant 19 : index
    %c0_47 = arith.constant 0 : index
    %155 = vector.load %arg8[%c19_46, %c0_47] : memref<24x256xf32, #tpu.memory_space<vmem>>, vector<1x3xf32>
    %156 = vector.broadcast %155 : vector<1x3xf32> to vector<2x3xf32>
    %157 = arith.addf %154, %156 : vector<2x3xf32>
    %cst_48 = arith.constant dense<0xFF800000> : vector<2xf32>
    %158 = vector.multi_reduction <maximumf>, %157, %cst_48 [1] : vector<2x3xf32> to vector<2xf32>
    %159 = vector.shape_cast %158 : vector<2xf32> to vector<2x1xf32>
    %160 = vector.broadcast %159 : vector<2x1xf32> to vector<2x3xf32>
    %161 = arith.subf %157, %160 : vector<2x3xf32>
    %162 = math.exp %161 : vector<2x3xf32>
    %cst_49 = arith.constant dense<0.000000e+00> : vector<2xf32>
    %163 = vector.multi_reduction <add>, %162, %cst_49 [1] : vector<2x3xf32> to vector<2xf32>
    %164 = vector.shape_cast %163 : vector<2xf32> to vector<2x1xf32>
    %165 = tpu.reciprocal %164 {approx = true} : vector<2x1xf32> -> vector<2x1xf32>
    %166 = vector.broadcast %165 : vector<2x1xf32> to vector<2x3xf32>
    %167 = arith.mulf %162, %166 : vector<2x3xf32>
    %c0_50 = arith.constant 0 : index
    %c0_51 = arith.constant 0 : index
    %168 = vector.load %arg5[%c0_50, %c0_51] : memref<32x2xbf16, #tpu.memory_space<vmem>>, vector<32x2xbf16>
    %169 = arith.truncf %167 : vector<2x3xf32> to vector<2x3xbf16>
    %cst_52 = arith.constant dense<0.000000e+00> : vector<32x3xf32>
    %170 = tpu.matmul %168, %169, %cst_52 {dimension_numbers = #tpu.dot_dimension_numbers<[1], [0], [0], [1], [0, 0, 1, 1], [], []>} : vector<32x2xbf16>, vector<2x3xbf16>, vector<32x3xf32> -> vector<32x3xf32>
    %171 = vector.extract_strided_slice %170 {offsets = [0, 0], sizes = [32, 1], strides = [1, 1]} : vector<32x3xf32> to vector<32x1xf32>
    %172 = vector.broadcast %171 : vector<32x1xf32> to vector<32x32xf32>
    %173 = arith.mulf %25, %172 : vector<32x32xf32>
    %174 = vector.extract_strided_slice %170 {offsets = [0, 1], sizes = [32, 1], strides = [1, 1]} : vector<32x3xf32> to vector<32x1xf32>
    %175 = vector.broadcast %174 : vector<32x1xf32> to vector<32x32xf32>
    %176 = arith.mulf %68, %175 : vector<32x32xf32>
    %177 = arith.addf %173, %176 : vector<32x32xf32>
    %178 = vector.extract_strided_slice %170 {offsets = [0, 2], sizes = [32, 1], strides = [1, 1]} : vector<32x3xf32> to vector<32x1xf32>
    %179 = vector.broadcast %178 : vector<32x1xf32> to vector<32x32xf32>
    %180 = arith.mulf %111, %179 : vector<32x32xf32>
    %181 = arith.addf %177, %180 : vector<32x32xf32>
    %c0_53 = arith.constant 0 : index
    %c0_54 = arith.constant 0 : index
    %182 = vector.load %arg6[%c0_53, %c0_54] : memref<16x32xbf16, #tpu.memory_space<vmem>>, vector<16x32xbf16>
    %183 = arith.truncf %181 : vector<32x32xf32> to vector<32x32xbf16>
    %cst_55 = arith.constant dense<0.000000e+00> : vector<16x32xf32>
    %184 = tpu.matmul %182, %183, %cst_55 {dimension_numbers = #tpu.dot_dimension_numbers<[1], [0], [0], [1], [0, 0, 1, 1], [], []>} : vector<16x32xbf16>, vector<32x32xbf16>, vector<16x32xf32> -> vector<16x32xf32>
    %185 = arith.addf %0, %184 : vector<16x32xf32>
    %c0_56 = arith.constant 0 : index
    %c0_57 = arith.constant 0 : index
    %186 = vector.load %arg8[%c0_56, %c0_57] : memref<24x256xf32, #tpu.memory_space<vmem>>, vector<1x32xf32>
    %187 = vector.broadcast %186 : vector<1x32xf32> to vector<16x32xf32>
    %188 = arith.mulf %185, %187 : vector<16x32xf32>
    %c1 = arith.constant 1 : index
    %c0_58 = arith.constant 0 : index
    %189 = vector.load %arg8[%c1, %c0_58] : memref<24x256xf32, #tpu.memory_space<vmem>>, vector<1x32xf32>
    %190 = vector.broadcast %189 : vector<1x32xf32> to vector<16x32xf32>
    %191 = arith.addf %188, %190 : vector<16x32xf32>
    %192 = arith.truncf %191 : vector<16x32xf32> to vector<16x32xbf16>
    %c144 = arith.constant 144 : index
    %c0_59 = arith.constant 0 : index
    %193 = vector.load %arg7[%c144, %c0_59] : memref<1200x256xbf16, #tpu.memory_space<vmem>>, vector<32x256xbf16>
    %cst_60 = arith.constant dense<0.000000e+00> : vector<16x256xf32>
    %194 = tpu.matmul %192, %193, %cst_60 {dimension_numbers = #tpu.dot_dimension_numbers<[1], [0], [0], [1], [0, 0, 1, 1], [], []>} : vector<16x32xbf16>, vector<32x256xbf16>, vector<16x256xf32> -> vector<16x256xf32>
    %c2 = arith.constant 2 : index
    %c0_61 = arith.constant 0 : index
    %195 = vector.load %arg8[%c2, %c0_61] : memref<24x256xf32, #tpu.memory_space<vmem>>, vector<1x256xf32>
    %196 = vector.broadcast %195 : vector<1x256xf32> to vector<16x256xf32>
    %197 = arith.addf %194, %196 : vector<16x256xf32>
    %c3_62 = arith.constant 3 : index
    %c0_63 = arith.constant 0 : index
    %198 = vector.load %arg8[%c3_62, %c0_63] : memref<24x256xf32, #tpu.memory_space<vmem>>, vector<1x256xf32>
    %199 = vector.broadcast %198 : vector<1x256xf32> to vector<16x256xf32>
    %200 = arith.mulf %197, %199 : vector<16x256xf32>
    %c4 = arith.constant 4 : index
    %c0_64 = arith.constant 0 : index
    %201 = vector.load %arg8[%c4, %c0_64] : memref<24x256xf32, #tpu.memory_space<vmem>>, vector<1x256xf32>
    %202 = vector.broadcast %201 : vector<1x256xf32> to vector<16x256xf32>
    %203 = arith.addf %200, %202 : vector<16x256xf32>
    %c19_65 = arith.constant 19 : index
    %c4_66 = arith.constant 4 : index
    %204 = vector.load %arg8[%c19_65, %c4_66] : memref<24x256xf32, #tpu.memory_space<vmem>>, vector<1x1xf32>
    %cst_67 = arith.constant 0.000000e+00 : f32
    %205 = vector.broadcast %cst_67 : f32 to vector<16x256xf32>
    %206 = arith.cmpf oge, %203, %205 : vector<16x256xf32>
    %207 = vector.broadcast %204 : vector<1x1xf32> to vector<16x256xf32>
    %208 = arith.mulf %207, %203 : vector<16x256xf32>
    %209 = arith.select %206, %203, %208 : vector<16x256xi1>, vector<16x256xf32>
    %210 = arith.truncf %209 : vector<16x256xf32> to vector<16x256xbf16>
    %c176 = arith.constant 176 : index
    %c0_68 = arith.constant 0 : index
    %211 = vector.load %arg7[%c176, %c0_68] : memref<1200x256xbf16, #tpu.memory_space<vmem>>, vector<256x256xbf16>
    %cst_69 = arith.constant dense<0.000000e+00> : vector<16x256xf32>
    %212 = tpu.matmul %210, %211, %cst_69 {dimension_numbers = #tpu.dot_dimension_numbers<[1], [0], [0], [1], [0, 0, 1, 1], [], []>} : vector<16x256xbf16>, vector<256x256xbf16>, vector<16x256xf32> -> vector<16x256xf32>
    %c5 = arith.constant 5 : index
    %c0_70 = arith.constant 0 : index
    %213 = vector.load %arg8[%c5, %c0_70] : memref<24x256xf32, #tpu.memory_space<vmem>>, vector<1x256xf32>
    %214 = vector.broadcast %213 : vector<1x256xf32> to vector<16x256xf32>
    %215 = arith.addf %212, %214 : vector<16x256xf32>
    %c6 = arith.constant 6 : index
    %c0_71 = arith.constant 0 : index
    %216 = vector.load %arg8[%c6, %c0_71] : memref<24x256xf32, #tpu.memory_space<vmem>>, vector<1x256xf32>
    %217 = vector.broadcast %216 : vector<1x256xf32> to vector<16x256xf32>
    %218 = arith.mulf %215, %217 : vector<16x256xf32>
    %c7 = arith.constant 7 : index
    %c0_72 = arith.constant 0 : index
    %219 = vector.load %arg8[%c7, %c0_72] : memref<24x256xf32, #tpu.memory_space<vmem>>, vector<1x256xf32>
    %220 = vector.broadcast %219 : vector<1x256xf32> to vector<16x256xf32>
    %221 = arith.addf %218, %220 : vector<16x256xf32>
    %c19_73 = arith.constant 19 : index
    %c5_74 = arith.constant 5 : index
    %222 = vector.load %arg8[%c19_73, %c5_74] : memref<24x256xf32, #tpu.memory_space<vmem>>, vector<1x1xf32>
    %cst_75 = arith.constant 0.000000e+00 : f32
    %223 = vector.broadcast %cst_75 : f32 to vector<16x256xf32>
    %224 = arith.cmpf oge, %221, %223 : vector<16x256xf32>
    %225 = vector.broadcast %222 : vector<1x1xf32> to vector<16x256xf32>
    %226 = arith.mulf %225, %221 : vector<16x256xf32>
    %227 = arith.select %224, %221, %226 : vector<16x256xi1>, vector<16x256xf32>
    %228 = arith.truncf %227 : vector<16x256xf32> to vector<16x256xbf16>
    %c432 = arith.constant 432 : index
    %c0_76 = arith.constant 0 : index
    %229 = vector.load %arg7[%c432, %c0_76] : memref<1200x256xbf16, #tpu.memory_space<vmem>>, vector<256x256xbf16>
    %cst_77 = arith.constant dense<0.000000e+00> : vector<16x256xf32>
    %230 = tpu.matmul %228, %229, %cst_77 {dimension_numbers = #tpu.dot_dimension_numbers<[1], [0], [0], [1], [0, 0, 1, 1], [], []>} : vector<16x256xbf16>, vector<256x256xbf16>, vector<16x256xf32> -> vector<16x256xf32>
    %c8 = arith.constant 8 : index
    %c0_78 = arith.constant 0 : index
    %231 = vector.load %arg8[%c8, %c0_78] : memref<24x256xf32, #tpu.memory_space<vmem>>, vector<1x256xf32>
    %232 = vector.broadcast %231 : vector<1x256xf32> to vector<16x256xf32>
    %233 = arith.addf %230, %232 : vector<16x256xf32>
    %234 = arith.addf %233, %197 : vector<16x256xf32>
    %cst_79 = arith.constant 5.000000e-01 : f32
    %235 = vector.broadcast %cst_79 : f32 to vector<16x256xf32>
    %236 = arith.mulf %234, %235 : vector<16x256xf32>
    %c9 = arith.constant 9 : index
    %c0_80 = arith.constant 0 : index
    %237 = vector.load %arg8[%c9, %c0_80] : memref<24x256xf32, #tpu.memory_space<vmem>>, vector<1x256xf32>
    %238 = vector.broadcast %237 : vector<1x256xf32> to vector<16x256xf32>
    %239 = arith.mulf %236, %238 : vector<16x256xf32>
    %c10 = arith.constant 10 : index
    %c0_81 = arith.constant 0 : index
    %240 = vector.load %arg8[%c10, %c0_81] : memref<24x256xf32, #tpu.memory_space<vmem>>, vector<1x256xf32>
    %241 = vector.broadcast %240 : vector<1x256xf32> to vector<16x256xf32>
    %242 = arith.addf %239, %241 : vector<16x256xf32>
    %c19_82 = arith.constant 19 : index
    %c6_83 = arith.constant 6 : index
    %243 = vector.load %arg8[%c19_82, %c6_83] : memref<24x256xf32, #tpu.memory_space<vmem>>, vector<1x1xf32>
    %cst_84 = arith.constant 0.000000e+00 : f32
    %244 = vector.broadcast %cst_84 : f32 to vector<16x256xf32>
    %245 = arith.cmpf oge, %242, %244 : vector<16x256xf32>
    %246 = vector.broadcast %243 : vector<1x1xf32> to vector<16x256xf32>
    %247 = arith.mulf %246, %242 : vector<16x256xf32>
    %248 = arith.select %245, %242, %247 : vector<16x256xi1>, vector<16x256xf32>
    %249 = arith.truncf %248 : vector<16x256xf32> to vector<16x256xbf16>
    %c688 = arith.constant 688 : index
    %c0_85 = arith.constant 0 : index
    %250 = vector.load %arg7[%c688, %c0_85] : memref<1200x256xbf16, #tpu.memory_space<vmem>>, vector<256x256xbf16>
    %cst_86 = arith.constant dense<0.000000e+00> : vector<16x256xf32>
    %251 = tpu.matmul %249, %250, %cst_86 {dimension_numbers = #tpu.dot_dimension_numbers<[1], [0], [0], [1], [0, 0, 1, 1], [], []>} : vector<16x256xbf16>, vector<256x256xbf16>, vector<16x256xf32> -> vector<16x256xf32>
    %c11 = arith.constant 11 : index
    %c0_87 = arith.constant 0 : index
    %252 = vector.load %arg8[%c11, %c0_87] : memref<24x256xf32, #tpu.memory_space<vmem>>, vector<1x256xf32>
    %253 = vector.broadcast %252 : vector<1x256xf32> to vector<16x256xf32>
    %254 = arith.addf %251, %253 : vector<16x256xf32>
    %255 = arith.addf %254, %236 : vector<16x256xf32>
    %cst_88 = arith.constant 5.000000e-01 : f32
    %256 = vector.broadcast %cst_88 : f32 to vector<16x256xf32>
    %257 = arith.mulf %255, %256 : vector<16x256xf32>
    %c12 = arith.constant 12 : index
    %c0_89 = arith.constant 0 : index
    %258 = vector.load %arg8[%c12, %c0_89] : memref<24x256xf32, #tpu.memory_space<vmem>>, vector<1x256xf32>
    %259 = vector.broadcast %258 : vector<1x256xf32> to vector<16x256xf32>
    %260 = arith.mulf %257, %259 : vector<16x256xf32>
    %c13 = arith.constant 13 : index
    %c0_90 = arith.constant 0 : index
    %261 = vector.load %arg8[%c13, %c0_90] : memref<24x256xf32, #tpu.memory_space<vmem>>, vector<1x256xf32>
    %262 = vector.broadcast %261 : vector<1x256xf32> to vector<16x256xf32>
    %263 = arith.addf %260, %262 : vector<16x256xf32>
    %c19_91 = arith.constant 19 : index
    %c7_92 = arith.constant 7 : index
    %264 = vector.load %arg8[%c19_91, %c7_92] : memref<24x256xf32, #tpu.memory_space<vmem>>, vector<1x1xf32>
    %cst_93 = arith.constant 0.000000e+00 : f32
    %265 = vector.broadcast %cst_93 : f32 to vector<16x256xf32>
    %266 = arith.cmpf oge, %263, %265 : vector<16x256xf32>
    %267 = vector.broadcast %264 : vector<1x1xf32> to vector<16x256xf32>
    %268 = arith.mulf %267, %263 : vector<16x256xf32>
    %269 = arith.select %266, %263, %268 : vector<16x256xi1>, vector<16x256xf32>
    %270 = arith.truncf %269 : vector<16x256xf32> to vector<16x256xbf16>
    %c944 = arith.constant 944 : index
    %c0_94 = arith.constant 0 : index
    %271 = vector.load %arg7[%c944, %c0_94] : memref<1200x256xbf16, #tpu.memory_space<vmem>>, vector<256x128xbf16>
    %cst_95 = arith.constant dense<0.000000e+00> : vector<16x128xf32>
    %272 = tpu.matmul %270, %271, %cst_95 {dimension_numbers = #tpu.dot_dimension_numbers<[1], [0], [0], [1], [0, 0, 1, 1], [], []>} : vector<16x256xbf16>, vector<256x128xbf16>, vector<16x128xf32> -> vector<16x128xf32>
    %c14 = arith.constant 14 : index
    %c0_96 = arith.constant 0 : index
    %273 = vector.load %arg8[%c14, %c0_96] : memref<24x256xf32, #tpu.memory_space<vmem>>, vector<1x128xf32>
    %274 = vector.broadcast %273 : vector<1x128xf32> to vector<16x128xf32>
    %275 = arith.addf %272, %274 : vector<16x128xf32>
    %c0_97 = arith.constant 0 : index
    %c0_98 = arith.constant 0 : index
    %276 = vector.load %arg9[%c0_97, %c0_98] : memref<16x128xf32, #tpu.memory_space<vmem>>, vector<16x128xf32>
    tpu.vector_store %arg9[%c0_97, %c0_98], %275 {strides = array<i32>} : memref<16x128xf32, #tpu.memory_space<vmem>>, vector<16x128xf32>,
    return
  }
  func.func @transform_0(%arg0: i32) -> (i32, i32) {
    %c0_i32 = arith.constant 0 : i32
    %c0_i32_0 = arith.constant 0 : i32
    %c0_i32_1 = arith.constant 0 : i32
    return %c0_i32, %c0_i32_0 : i32, i32
  }
  func.func @transform_1(%arg0: i32) -> (i32, i32) {
    %c0_i32 = arith.constant 0 : i32
    %c0_i32_0 = arith.constant 0 : i32
    %c0_i32_1 = arith.constant 0 : i32
    return %c0_i32, %c0_i32_0 : i32, i32
  }
  func.func @transform_2(%arg0: i32) -> (i32, i32) {
    %c0_i32 = arith.constant 0 : i32
    %c0_i32_0 = arith.constant 0 : i32
    %c0_i32_1 = arith.constant 0 : i32
    return %c0_i32, %c0_i32_0 : i32, i32
  }
  func.func @transform_3(%arg0: i32) -> (i32, i32) {
    %c0_i32 = arith.constant 0 : i32
    %c0_i32_0 = arith.constant 0 : i32
    %c0_i32_1 = arith.constant 0 : i32
    return %c0_i32, %c0_i32_0 : i32, i32
  }
  func.func @transform_4(%arg0: i32) -> (i32, i32) {
    %c0_i32 = arith.constant 0 : i32
    %c0_i32_0 = arith.constant 0 : i32
    %c0_i32_1 = arith.constant 0 : i32
    return %c0_i32, %c0_i32_0 : i32, i32
  }
  func.func @transform_5(%arg0: i32) -> (i32, i32) {
    %c0_i32 = arith.constant 0 : i32
    %c0_i32_0 = arith.constant 0 : i32
    %c0_i32_1 = arith.constant 0 : i32
    return %c0_i32, %c0_i32_0 : i32, i32
  }
  func.func @transform_6(%arg0: i32) -> (i32, i32) {
    %c0_i32 = arith.constant 0 : i32
    %c0_i32_0 = arith.constant 0 : i32
    %c0_i32_1 = arith.constant 0 : i32
    return %c0_i32, %c0_i32_0 : i32, i32
  }
  func.func @transform_7(%arg0: i32) -> (i32, i32) {
    %c0_i32 = arith.constant 0 : i32
    %c0_i32_0 = arith.constant 0 : i32
    %c0_i32_1 = arith.constant 0 : i32
    return %c0_i32, %c0_i32_0 : i32, i32
  }
  func.func @transform_8(%arg0: i32) -> (i32, i32) {
    %c0_i32 = arith.constant 0 : i32
    %c0_i32_0 = arith.constant 0 : i32
    %c0_i32_1 = arith.constant 0 : i32
    return %c0_i32, %c0_i32_0 : i32, i32
  }
}

</mosaic_0001>

<bundles_post_ra>
// kernel: dmpnn_forward.1
= control target key start
LH: loop header
LB: loop body
LE: loop exit
PB: predicated region body
PF: predicated region fallthrough
CT: control target
= control target key end

     0   :  { %13 = vsyncpa [#allocation3], 0  ;;  %s4275_s0 = inlined_call_operand.vmem [shape: f32[16,32], index: 0, kind: input, shape index: {}]   ;;  %s4276_s1 = inlined_call_operand.hbm [shape: bf16[32,48], index: 1, kind: input, shape index: {}]   ;;  %s4277_s2 = inlined_call_operand.hbm [shape: bf16[32,32], index: 2, kind: input, shape index: {}]   ;;  %s4278_s3 = inlined_call_operand.hbm [shape: bf16[2,32], index: 3, kind: input, shape index: {}]   ;;  %s4279_s4 = inlined_call_operand.vmem [shape: bf16[32,2], index: 4, kind: input, shape index: {}]   ;;  %s4280_s5 = inlined_call_operand.vmem [shape: bf16[16,32], index: 5, kind: input, shape index: {}]   ;;  %s4281_s6 = inlined_call_operand.hbm [shape: bf16[1200,256], index: 6, kind: input, shape index: {}]   ;;  %s4282_s7 = inlined_call_operand.hbm [shape: f32[24,256], index: 7, kind: input, shape index: {}]   ;;  %s4283_s8 = inlined_call_operand.hbm [shape: f32[16,128], index: 8, kind: output, shape index: {}]  }
   0x1   :  { %14 = vsyncpa [#allocation6], 0 }
   0x2   :  { %15 = vsyncpa [#allocation9], 0 }
   0x3   :  { %16 = vsyncpa [#allocation4], 0  ;;  %s3685_s27 = smov [#allocation5]   ;;  %s3686_s29 = smov [#allocation8]  }
   0x4   :  { %s36_s28 = sshll.u32 %s3685_s27, 4  ;;  %s62_s30 = sshll.u32 %s3686_s29, 4  ;;  %s37_s28 = int_to_ptr.vmem [resolvable:$true] %s36_s28  ;;  %s63_s30 = int_to_ptr.vmem [resolvable:$true] %s62_s30 }
   0x5   :  { %s3565_s9 = scalar_lea.vmem %s37_s28, 256  ;;  %p3570_p1 = scmp.lt.s32.totalorder %s37_s28, %s37_s28 }
   0x6   :  { %p3566_p0 = scmp.ne.s32.totalorder %s37_s28, %s3565_s9  ;;  %p3571_p2 = scmp.lt.s32.totalorder %s3565_s9, %s3565_s9 }
   0x8   :  { %p3572_p3 = por %p3571_p2, %p3570_p1 }
   0xa   :  { %p3573_p4 = pnand %p3572_p3, %p3566_p0 }
   0xc   :  { %3576 = shalt.err (!%p3573_p4)
}
   0xd   :  { %s3687_s10 = smov 64   ;;  %s3688_s11 = smov 4  }
   0xe   :  { %42 = dma.hbm_to_vmem [thread:$0]  %s4277_s2, 256, %s37_s28, [#allocation6], %s3687_s10, %s3687_s10, %s3688_s11  }
   0xf   :  { %s3585_s14 = scalar_lea.vmem %s63_s30, 19200  ;;  %p3590_p6 = scmp.lt.s32.totalorder %s63_s30, %s63_s30 }
  0x10   :  { %p3586_p5 = scmp.ne.s32.totalorder %s63_s30, %s3585_s14  ;;  %p3591_p7 = scmp.lt.s32.totalorder %s3585_s14, %s3585_s14 }
  0x12   :  { %p3592_p8 = por %p3591_p7, %p3590_p6 }
  0x14   :  { %p3593_p9 = pnand %p3592_p8, %p3586_p5 }
  0x16   :  { %3596 = shalt.err (!%p3593_p9)
}
  0x17   :  { %s3689_s15 = smov 128   ;;  %s3690_s16 = smov 8  }
  0x18   :  { %68 = dma.hbm_to_vmem [thread:$0]  %s4281_s6, 19200, %s63_s30, [#allocation9], %s3689_s15, %s3689_s15, %s3690_s16  }
  0x19   :  { %s3691_s19 = smov [#allocation2]   ;;  %s3692_s21 = smov [#allocation7]  }
  0x1a   :  { %s24_s20 = sshll.u32 %s3691_s19, 4  ;;  %s49_s2 = sshll.u32 %s3692_s21, 4  ;;  %s25_s20 = int_to_ptr.vmem [resolvable:$true] %s24_s20  ;;  %s50_s2 = int_to_ptr.vmem [resolvable:$true] %s49_s2 }
  0x1b   :  { %s3605_s22 = scalar_lea.vmem %s25_s20, 256  ;;  %p3610_p11 = scmp.lt.s32.totalorder %s25_s20, %s25_s20 }
  0x1c   :  { %p3606_p10 = scmp.ne.s32.totalorder %s25_s20, %s3605_s22  ;;  %p3611_p12 = scmp.lt.s32.totalorder %s3605_s22, %s3605_s22 }
  0x1e   :  { %p3612_p13 = por %p3611_p12, %p3610_p11 }
  0x20   :  { %p3613_p0 = pnand %p3612_p13, %p3606_p10 }
  0x22   :  { %3616 = shalt.err (!%p3613_p0)
}
  0x23   :  { %30 = dma.hbm_to_vmem [thread:$0]  %s4276_s1, 256, %s25_s20, [#allocation3], %s3687_s10, %s3687_s10, %s3688_s11  }
  0x24   :  { %s3625_s25 = scalar_lea.vmem %s50_s2, 16  ;;  %s3629_s6 = scalar_lea.vmem %s50_s2, 32 }
  0x25   :  { %p3626_p1 = scmp.ne.s32.totalorder %s50_s2, %s3625_s25  ;;  %p3630_p2 = scmp.lt.s32.totalorder %s50_s2, %s50_s2 }
  0x26   :  { %p3631_p3 = scmp.lt.s32.totalorder %s3629_s6, %s3625_s25 }
  0x28   :  { %p3632_p4 = por %p3631_p3, %p3630_p2 }
  0x2a   :  { %p3633_p5 = pnand %p3632_p4, %p3626_p1 }
  0x2c   :  { %3636 = shalt.err (!%p3633_p5)
}
  0x2d   :  { %52 = dma.hbm_to_vmem [thread:$0]  %s4278_s3, 16, %s50_s2, [#allocation6]  }
  0x2e   :  { %s3693_s28 = smov [#allocation10]  }
  0x2f   :  { %s74_s29 = sshll.u32 %s3693_s28, 4  ;;  %s75_s29 = int_to_ptr.vmem [resolvable:$true] %s74_s29 }
  0x30   :  { %s3645_s30 = scalar_lea.vmem %s75_s29, 768  ;;  %p3650_p7 = scmp.lt.s32.totalorder %s75_s29, %s75_s29 }
  0x31   :  { %p3646_p6 = scmp.ne.s32.totalorder %s75_s29, %s3645_s30  ;;  %p3651_p8 = scmp.lt.s32.totalorder %s3645_s30, %s3645_s30 }
  0x33   :  { %p3652_p9 = por %p3651_p8, %p3650_p7 }
  0x35   :  { %p3653_p10 = pnand %p3652_p9, %p3646_p6 }
  0x37   :  { %3656 = shalt.err (!%p3653_p10)
}
  0x38   :  { %s3694_s1 = smov 256   ;;  %s3695_s9 = smov 16  }
  0x39   :  { %80 = dma.hbm_to_vmem [thread:$0]  %s4282_s7, 768, %s75_s29, [#allocation9], %s3694_s1, %s3694_s1, %s3695_s9  }
  0x3a   :  { %3677 = dma.done.wait [#allocation3], 256  }
  0x3b   :  { %3678 = vsyncadd [#allocation3], 4294967040 }
  0x3c   :  { %3679 = dma.done.wait [#allocation6], 272  }
  0x3d   :  { %3680 = vsyncadd [#allocation6], 4294967024 }
  0x3e   :  { %3681 = dma.done.wait [#allocation9], 19968  }
  0x3f   :  { %3682 = vsyncadd [#allocation9], 4294947328  ;;  %v3696_v0 = vmov 0.0   ;;  %vm3697_vm0 = vmmov 0   ;;  %v3330_v1 = vld [vmem:[#allocation8 + $0x10] ss:$8 sps:$4 sm:$0xff]  }
  0x40   :  { %3102 = vmatprep.subr.bf16.mxu0 %v3696_v0  ;;  %3106 = vmatprep.mubr.msk.bf16.mxu0 %vm3697_vm0, %v3696_v0  ;;  %v3331_v2 = vld [vmem:[#allocation8] ss:$8 sps:$4 sm:$0xff]   ;;  %vm116_vm1 = vcmask 261120   ;;  %vm193_vm2 = vcmask 392192   ;;  %s3698_s14 = smov 96   ;;  %v3786_v19 = vld [vmem:[#allocation5] sm:$0xff]  }
  0x41   :  { %3103 = vmatpush3.bf16.msra.mxu0 %v3330_v1  ;;  %v97_v3 = vld [vmem:[%s4275_s0] sm:$0xff]  ;;  %v98_v4 = vld [vmem:[%s4275_s0 + $0x8] sm:$0xff]  ;;  %3132 = vmatprep.mubr.msk.bf16.mxu1 %vm116_vm1, %v3786_v19  ;;  %v3804_v26 = vld [vmem:[#allocation5 + $0x8] sm:$0xff]   ;;  %s3699_s17 = smov 32   ;;  %s3700_s18 = smov 125   ;;  %vm441_vm3 = vcmask 523264  }
  0x42   :  { %3104 = vmatprep.subr.bf16.mxu0 %v3696_v0  ;;  %v103_v5 = vpack.c.bf16 %v98_v4, %v97_v3  ;;  %v3332_v6 = vld [vmem:[#allocation8 + $0x80] ss:$8 sps:$4 sm:$0xff]   ;;  %v3808_v27 = vld [vmem:[#allocation8 + $0x70] ss:$8 sps:$4 sm:$0xff]   ;;  %v3701_v58 = vmov 0   ;;  %vm527_vm8 = vcmask 15360  }
  0x43   :  { %v3333_v9 = vld [vmem:[#allocation2] sm:$0xff]   ;;  %v3334_v18 = vld [vmem:[#allocation2 + $0x8] sm:$0xff]   ;;  %v3839_v39 = vld [vmem:[#allocation8 + $0x50] ss:$8 sps:$4 sm:$0xff]   ;;  %3281 = vset.pattern.permute.xlu0 %v3701_v58  ;;  %3282 = vset.pattern.permute.xlu1 %v3701_v58  ;;  %vm723_vm9 = vcmask 254976   ;;  %vm1393_vm10 = vcmask 7168  }
  0x44   :  { %v3810_v28 = vld [vmem:[#allocation8 + $0x60] ss:$8 sps:$4 sm:$0xff]   ;;  %v3847_v41 = vld [vmem:[#allocation10 + $0x23] ss:$0 sm:$0xff]  ;;  %vm1397_vm11 = vcmask 17408   ;;  %vm1426_vm12 = vcmask 1040384  }
  0x45   :  { %3105 = vmatpush3.bf16.msra.mxu0 %v3331_v2  ;;  %v3843_v40 = vld [vmem:[#allocation8 + $0x40] ss:$8 sps:$4 sm:$0xff]  }
  0x46   :  { %3110 = vmatprep.subr.bf16.mxu0 %v3332_v6 }
  0x48   :  { %3107 = vmatmul.mubr.msk.bf16.vlgmr.msra.gmra.mxu0 %vm116_vm1, %v103_v5  ;;  %v3899_v5 = vld [vmem:[%s4279_s4] sm:$0xff]  }
  0x49   :  { %3111 = vmatpush3.bf16.msra.mxu0 %v3332_v6  ;;  %3116 = vmatprep.mubr.msk.bf16.mxu0 %vm193_vm2, %v3333_v9  ;;  %v3904_v6 = vld [vmem:[%s4279_s4 + $0x8] sm:$0xff]  }
 0x108   :  { %v154_v7 = vpop.f32.mrf.mxu0 }
 0x10a   :  { %v3108_v8 = vpop.f32.mrf.mxu0 }
 0x10b   :  { %v258_v8 = vunpack.c.l.bf16 %v3899_v5 }
 0x10c   :  { %v157_v10 = vpop.f32.mrf.mxu0 }
 0x10d   :  { %v171_v11 = vpack.c.bf16 %v157_v10, %v154_v7  ;;  %v3276_v12 = vpack.i.bf16 %v157_v10, %v154_v7  ;;  %v259_v7 = vunpack.c.h.bf16 %v3899_v5  ;;  %v261_v10 = vunpack.c.h.bf16 %v3904_v6 }
 0x10e   :  { %v3109_v13 = vpop.f32.mrf.mxu0  ;;  %vm3914_vm5 = vcmp.gt.f32.partialorder %v258_v8, 0.5 }
 0x10f   :  { %3277 = vrot.lane.b32.xlu0 %v3276_v12, %s3698_s14  ;;  %vm3909_vm4 = vcmp.gt.f32.partialorder %v259_v7, 0.5  ;;  %v260_v12 = vunpack.c.l.bf16 %v3904_v6  ;;  %vm3918_vm6 = vcmp.gt.f32.partialorder %v261_v10, 0.5 }
 0x111   :  { %vm3924_vm7 = vcmp.gt.f32.partialorder %v260_v12, 0.5 }
 0x181   :  { %v3278_v14 = vpop.permute.xlu0 %3277 }
 0x182   :  { %v3280_v15 = vunpack.i.h.bf16 %v3278_v14  ;;  %v3279_v16 = vunpack.i.l.bf16 %v3278_v14 }
 0x184   :  { %v172_v17 = vpack.c.bf16 %v3280_v15, %v3279_v16 }
 0x186   :  { %3112 = vmatprep.subr.bf16.mxu0 %v172_v17 }
 0x187   :  { %3113 = vmatpush3.bf16.msra.mxu0 %v172_v17 }
 0x188   :  { %3114 = vmatprep.subr.bf16.mxu0 %v171_v11 }
 0x18b   :  { %3115 = vmatpush3.bf16.msra.mxu0 %v171_v11 }
 0x18e   :  { %3117 = vmatmul.mubr.msk.bf16.vlgmr.msra.gmra.mxu0 %vm193_vm2, %v3334_v18 }
 0x18f   :  { %3124 = vmatprep.mubr.msk.bf16.mxu0 %vm116_vm1, %v3786_v19 }
 0x24e   :  { %v3792_v20 = vpop.f32.mrf.mxu0 }
 0x250   :  { %v3794_v21 = vpop.f32.mrf.mxu0 }
 0x252   :  { %v3796_v22 = vpop.f32.mrf.mxu0 }
 0x253   :  { %v282_v23 = vpack.c.bf16 %v3796_v22, %v3792_v20 }
 0x254   :  { %v3800_v24 = vpop.f32.mrf.mxu0 }
 0x255   :  { %3120 = vmatprep.subr.bf16.mxu0 %v282_v23  ;;  %v281_v25 = vpack.c.bf16 %v3800_v24, %v3794_v21 }
 0x256   :  { %3121 = vmatpush3.bf16.msra.mxu0 %v282_v23 }
 0x257   :  { %3122 = vmatprep.subr.bf16.mxu0 %v281_v25 }
 0x25a   :  { %3123 = vmatpush3.bf16.msra.mxu0 %v281_v25 }
 0x25b   :  { %3136 = vmatprep.subr.bf16.mxu0 %v3808_v27 }
 0x25d   :  { %3125 = vmatmul.mubr.msk.bf16.vlgmr.msra.gmra.mxu0 %vm116_vm1, %v3804_v26 }
 0x25e   :  { %3137 = vmatpush3.bf16.msra.mxu0 %v3808_v27 }
 0x25f   :  { %3138 = vmatprep.subr.bf16.mxu0 %v3810_v28 }
 0x262   :  { %3139 = vmatpush3.bf16.msra.mxu0 %v3810_v28 }
 0x263   :  { %3140 = vmatprep.subr.bf16.mxu0 %v3839_v39 }
 0x266   :  { %3141 = vmatpush3.bf16.msra.mxu0 %v3839_v39 }
 0x267   :  { %3142 = vmatprep.subr.bf16.mxu0 %v3843_v40 }
 0x26a   :  { %3143 = vmatpush3.bf16.msra.mxu0 %v3843_v40 }
 0x31d   :  { %v3126_v29 = vpop.f32.mrf.mxu0 }
 0x31e   :  { %v3817_v32 = vadd.f32 %v3126_v29, %v3792_v20 }
 0x31f   :  { %v333_v30 = vpop.f32.mrf.mxu0 }
 0x320   :  { %v3823_v35 = vadd.f32 %v333_v30, %v3794_v21 }
 0x321   :  { %v3127_v31 = vpop.f32.mrf.mxu0 }
 0x322   :  { %v3820_v33 = vadd.f32 %v3127_v31, %v3796_v22 }
 0x323   :  { %v336_v34 = vpop.f32.mrf.mxu0 }
 0x324   :  { %v3826_v36 = vadd.f32 %v336_v34, %v3800_v24  ;;  %v353_v37 = vpack.c.bf16 %v3820_v33, %v3817_v32 }
 0x326   :  { %409 = vrot.lane.b32.xlu1 %v353_v37, %s3699_s17  ;;  %3128 = vmatprep.subr.bf16.mxu1 %v353_v37  ;;  %v352_v38 = vpack.c.bf16 %v3826_v36, %v3823_v35 }
 0x327   :  { %3129 = vmatpush3.bf16.msra.mxu1 %v353_v37 }
 0x328   :  { %407 = vrot.lane.b32.xlu0 %v352_v38, %s3699_s17  ;;  %3130 = vmatprep.subr.bf16.mxu1 %v352_v38 }
 0x32a   :  { %496 = vrot.lane.b32.xlu1 %v3847_v41, %s3700_s18 }
 0x32b   :  { %3131 = vmatpush3.bf16.msra.mxu1 %v352_v38 }
 0x32c   :  { %3148 = vmatprep.subr.bf16.mxu1 %v3696_v0 }
 0x32e   :  { %3133 = vmatmul.mubr.msk.bf16.vlgmr.msra.gmra.mxu1 %vm116_vm1, %v3804_v26 }
 0x32f   :  { %3152 = vmatprep.mubr.msk.bf16.mxu1 %vm3697_vm0, %v3696_v0 }
 0x398   :  { %v410_v54 = vpop.permute.xlu1 %409 }
 0x39a   :  { %v408_v53 = vpop.permute.xlu0 %407 }
 0x39c   :  { %v3887_v60 = vpop.permute.xlu1 %496 }
 0x3ee   :  { %v3134_v42 = vpop.f32.mrf.mxu1 }
 0x3ef   :  { %v3851_v45 = vadd.f32 %v3134_v42, %v3792_v20 }
 0x3f0   :  { %v388_v43 = vpop.f32.mrf.mxu1 }
 0x3f1   :  { %v3857_v49 = vadd.f32 %v388_v43, %v3794_v21 }
 0x3f2   :  { %v3135_v44 = vpop.f32.mrf.mxu1 }
 0x3f3   :  { %v3854_v46 = vadd.f32 %v3135_v44, %v3796_v22  ;;  %v404_v47 = vpack.c.bf16 %v3135_v44, %v3134_v42 }
 0x3f4   :  { %v391_v48 = vpop.f32.mrf.mxu1 }
 0x3f5   :  { %v403_v50 = vpack.c.bf16 %v391_v48, %v388_v43  ;;  %v3860_v51 = vadd.f32 %v391_v48, %v3800_v24  ;;  %v3864_v52 = vpack.c.bf16 %v3854_v46, %v3851_v45  ;;  %v416_v57 = vsel %vm116_vm1, %v404_v47, %v410_v54 }
 0x3f7   :  { %3164 = vmatprep.subr.bf16.mxu0 %v3864_v52  ;;  %v413_v55 = vsel %vm116_vm1, %v403_v50, %v408_v53  ;;  %v3870_v56 = vpack.c.bf16 %v3860_v51, %v3857_v49 }
 0x3f8   :  { %3144 = vmatprep.mubr.msk.bf16.mxu0 %vm441_vm3, %v413_v55 }
 0x3f9   :  { %3145 = vmatmul.mubr.msk.bf16.vlgmr.msra.gmra.mxu0 %vm441_vm3, %v416_v57 }
 0x3fa   :  { %3165 = vmatpush3.bf16.msra.mxu0 %v3864_v52  ;;  %3168 = vmatprep.mubr.msk.bf16.mxu0 %vm116_vm1, %v3786_v19 }
 0x3fb   :  { %3166 = vmatprep.subr.bf16.mxu0 %v3870_v56 }
 0x3fe   :  { %3167 = vmatpush3.bf16.msra.mxu0 %v3870_v56 }
 0x3ff   :  { %3184 = vmatprep.subr.bf16.mxu0 %v3696_v0 }
 0x401   :  { %3169 = vmatmul.mubr.msk.bf16.vlgmr.msra.gmra.mxu0 %vm116_vm1, %v3804_v26 }
 0x402   :  { %3188 = vmatprep.mubr.msk.bf16.mxu0 %vm3697_vm0, %v3696_v0 }
 0x4b9   :  { %v3146_v59 = vpop.f32.mrf.mxu0 }
 0x4ba   :  { %v501_v4 = vadd.f32 %v3146_v59, %v3887_v60 }
 0x4bb   :  { %v480_v61 = vpop.f32.mrf.mxu0 }
 0x4bc   :  { %v3890_v62 = vadd.f32 %v3887_v60, %v480_v61 }
 0x4bd   :  { %v3147_v63 = vpop.f32.mrf.mxu0 }
 0x4be   :  { %505 = vperm.xlu0 %3281, %v3890_v62   ;;  %v502_v2 = vadd.f32 %v3147_v63, %v3887_v60 }
 0x4bf   :  { %v483_v1 = vpop.f32.mrf.mxu0 }
 0x4c0   :  { %v500_v3 = vadd.f32 %v3887_v60, %v483_v1 }
 0x4c2   :  { %520 = vperm.xlu0 %3281, %v502_v2   ;;  %510 = vperm.xlu1 %3282, %v500_v3  }
 0x4c6   :  { %515 = vperm.xlu1 %3282, %v501_v4  }
 0x539   :  { %v506_v9 = vpop.permute.xlu0 %505 }
 0x53a   :  { %v523_v23 = vsel %vm3914_vm5, %v506_v9, -1e+30 }
 0x53b   :  { %v528_v34 = vsel %vm527_vm8, %v523_v23, -inf }
 0x53d   :  { %v521_v15 = vpop.permute.xlu0 %520  ;;  %v511_v16 = vpop.permute.xlu1 %510 }
 0x53e   :  { %v524_v17 = vsel %vm3909_vm4, %v511_v16, -1e+30  ;;  %v526_v25 = vsel %vm3918_vm6, %v521_v15, -1e+30 }
 0x53f   :  { %v529_v29 = vsel %vm527_vm8, %v524_v17, -inf  ;;  %v531_v37 = vsel %vm527_vm8, %v526_v25, -inf }
 0x540   :  { %v532_v42 = vmax.f32 %v528_v34, %v529_v29 }
 0x541   :  { %v516_v30 = vpop.permute.xlu1 %515 }
 0x542   :  { %v525_v31 = vsel %vm3924_vm7, %v516_v30, -1e+30 }
 0x543   :  { %v530_v38 = vsel %vm527_vm8, %v525_v31, -inf }
 0x544   :  { %v533_v43 = vmax.f32 %v530_v38, %v531_v37 }
 0x546   :  { %v534_v44 = vmax.f32 %v532_v42, %v533_v43 }
 0x548   :  { %v535_v47 = vrot.slane %v534_v44, 4 }
 0x54a   :  { %v536_v48 = vmax.f32 %v534_v44, %v535_v47 }
 0x54c   :  { %v537_v50 = vrot.slane %v536_v48, 2 }
 0x54e   :  { %v538_v53 = vmax.f32 %v536_v48, %v537_v50 }
 0x550   :  { %v539_v54 = vrot.slane %v538_v53, 1 }
 0x552   :  { %v540_v55 = vmax.f32 %v538_v53, %v539_v54 }
 0x554   :  { %v544_v57 = vsel %vm3918_vm6, %v540_v55, 0.0  ;;  %v543_v59 = vsel %vm3924_vm7, %v540_v55, 0.0  ;;  %v542_v1 = vsel %vm3909_vm4, %v540_v55, 0.0  ;;  %v541_v7 = vsel %vm3914_vm5, %v540_v55, 0.0 }
 0x555   :  { %v554_v61 = vsel %vm527_vm8, %v544_v57, 0.0  ;;  %v551_v63 = vsel %vm527_vm8, %v543_v59, 0.0  ;;  %v548_v8 = vsel %vm527_vm8, %v542_v1, 0.0  ;;  %v545_v9 = vsel %vm527_vm8, %v541_v7, 0.0 }
 0x556   :  { %555 = vadd.xlane.f32.xlu0 %v554_v61  ;;  %552 = vadd.xlane.f32.xlu1 %v551_v63 }
 0x55a   :  { %549 = vadd.xlane.f32.xlu1 %v548_v8  ;;  %546 = vadd.xlane.f32.xlu0 %v545_v9 }
 0x5df   :  { %v556_v10 = vpop.xlane.xlu0 %555  ;;  %v553_v12 = vpop.xlane.xlu1 %552 }
 0x5e0   :  { %v560_v15 = vsub.f32 %v502_v2, %v556_v10  ;;  %v559_v16 = vsub.f32 %v501_v4, %v553_v12 }
 0x5e2   :  { %v567_v17 = vmul.f32 1.442695, %v560_v15  ;;  %v565_v23 = vmul.f32 1.442695, %v559_v16  ;;  %v3964_v16 = vld [vmem:[#allocation7] sm:$0x1] }
 0x5e3   :  { %v550_v25 = vpop.xlane.xlu1 %549  ;;  %v547_v29 = vpop.xlane.xlu0 %546 }
 0x5e4   :  { %3514 = vpow2.f32 %v567_v17  ;;  %v558_v30 = vsub.f32 %v500_v3, %v550_v25  ;;  %v557_v31 = vsub.f32 %v3890_v62, %v547_v29  ;;  %v3702_v17 = vmov 32  }
 0x5e5   :  { %3516 = vpow2.f32 %v565_v23  ;;  %v3972_v23 = vld [vmem:[#allocation8 + $0x30] ss:$8 sps:$4 sm:$0xff]  }
 0x5e6   :  { %v563_v34 = vmul.f32 1.442695, %v558_v30  ;;  %v561_v37 = vmul.f32 1.442695, %v557_v31 }
 0x5e8   :  { %3518 = vpow2.f32 %v563_v34  ;;  %v3976_v34 = vld [vmem:[#allocation8 + $0x20] ss:$8 sps:$4 sm:$0xff]  }
 0x5e9   :  { %3520 = vpow2.f32 %v561_v37 }
 0x5f1   :  { %v3515_v38 = vpop.eup %3514 }
 0x5f2   :  { %v3517_v42 = vpop.eup %3516  ;;  %586 = vperm.xlu1 %3282, %v3515_v38  }
 0x5f3   :  { %581 = vperm.xlu0 %3281, %v3517_v42   ;;  %v3283_v44 = vpack.i.bf16 %v3515_v38, %v3517_v42  ;;  %v3170_v38 = vpop.f32.mrf.mxu0 }
 0x5f5   :  { %v3519_v43 = vpop.eup %3518  ;;  %v767_v42 = vpop.f32.mrf.mxu0 }
 0x5f6   :  { %v3521_v2 = vpop.eup %3520 }
 0x5f7   :  { %576 = vperm.xlu0 %3281, %v3519_v43   ;;  %571 = vperm.xlu1 %3282, %v3521_v2   ;;  %v3288_v4 = vpack.i.bf16 %v3519_v43, %v3521_v2  ;;  %v3171_v43 = vpop.f32.mrf.mxu0 }
 0x5f9   :  { %v770_v2 = vpop.f32.mrf.mxu0 }
 0x5fb   :  { %3289 = vrot.lane.b32.xlu0 %v3288_v4, %s3699_s17  ;;  %3284 = vrot.lane.b32.xlu1 %v3283_v44, %s3699_s17  ;;  %v782_v44 = vpack.c.bf16 %v770_v2, %v767_v42 }
 0x5fc   :  { %3293 = vset.pattern.permute.xlu1 %v3702_v17 }
 0x5ff   :  { %786 = vrot.lane.b32.xlu0 %v3870_v56, %s3699_s17 }
 0x66d   :  { %v587_v62 = vpop.permute.xlu1 %586 }
 0x66e   :  { %v582_v3 = vpop.permute.xlu0 %581  ;;  %v592_v50 = vmul.f32 %v587_v62, %v3820_v33 }
 0x66f   :  { %v591_v53 = vmul.f32 %v582_v3, %v3817_v32 }
 0x672   :  { %v572_v47 = vpop.permute.xlu1 %571  ;;  %v577_v48 = vpop.permute.xlu0 %576 }
 0x673   :  { %v589_v1 = vmul.f32 %v572_v47, %v3823_v35  ;;  %v590_v7 = vmul.f32 %v577_v48, %v3826_v36 }
 0x676   :  { %v3285_v54 = vpop.permute.xlu1 %3284  ;;  %v3290_v55 = vpop.permute.xlu0 %3289 }
 0x677   :  { %v3287_v57 = vunpack.i.h.bf16 %v3285_v54  ;;  %v3286_v59 = vunpack.i.l.bf16 %v3285_v54  ;;  %v3292_v61 = vunpack.i.h.bf16 %v3290_v55  ;;  %v3291_v63 = vunpack.i.l.bf16 %v3290_v55 }
 0x678   :  { %v3999_v54 = vadd.f32 %v770_v2, %v3800_v24 }
 0x679   :  { %v608_v56 = vsel %vm116_vm1, %v592_v50, %v3287_v57  ;;  %v607_v8 = vsel %vm116_vm1, %v591_v53, %v3286_v59  ;;  %v606_v10 = vsel %vm116_vm1, %v590_v7, %v3292_v61  ;;  %v605_v12 = vsel %vm116_vm1, %v589_v1, %v3291_v63 }
 0x67a   :  { %v610_v9 = vpack.c.bf16 %v608_v56, %v607_v8  ;;  %v609_v15 = vpack.c.bf16 %v606_v10, %v605_v12  ;;  %v787_v3 = vpop.permute.xlu0 %786  ;;  %v3995_v50 = vadd.f32 %v3170_v38, %v3792_v20  ;;  %v783_v53 = vpack.c.bf16 %v3171_v43, %v3170_v38 }
 0x67b   :  { %v792_v48 = vsel %vm116_vm1, %v782_v44, %v787_v3 }
 0x67c   :  { %3149 = vmatpush3.bf16.msra.mxu1 %v610_v9 }
 0x67d   :  { %3150 = vmatprep.subr.bf16.mxu1 %v3696_v0 }
 0x680   :  { %3151 = vmatpush3.bf16.msra.mxu1 %v609_v15 }
 0x681   :  { %3156 = vmatprep.subr.bf16.mxu1 %v3696_v0 }
 0x683   :  { %3153 = vmatmul.mubr.msk.bf16.vlgmr.msra.gmra.mxu1 %vm116_vm1, %v3964_v16 }
 0x684   :  { %3160 = vmatprep.mubr.msk.bf16.mxu1 %vm3697_vm0, %v3696_v0  ;;  %3157 = vmatpush3.bf16.msra.mxu1 %v3972_v23 }
 0x685   :  { %3158 = vmatprep.subr.bf16.mxu1 %v3696_v0 }
 0x688   :  { %3159 = vmatpush3.bf16.msra.mxu1 %v3976_v34 }
 0x689   :  { %3172 = vmatprep.subr.bf16.mxu1 %v3808_v27 }
 0x743   :  { %v648_v25 = vpop.f32.mrf.mxu1 }
 0x744   :  { %3522 = vrcp.f32 %v648_v25 }
 0x745   :  { %v3154_v29 = vpop.f32.mrf.mxu1 }
 0x747   :  { %v651_v30 = vpop.f32.mrf.mxu1 }
 0x749   :  { %v3155_v31 = vpop.f32.mrf.mxu1 }
 0x751   :  { %v3523_v37 = vpop.eup %3522 }
 0x752   :  { %657 = vperm.xlu1 %3293, %v3523_v37  }
 0x756   :  { %788 = vrot.lane.b32.xlu1 %v3864_v52, %s3699_s17  ;;  %v3991_v52 = vadd.f32 %v3171_v43, %v3796_v22  ;;  %v4007_v22 = vadd.f32 %v767_v42, %v3794_v21 }
 0x757   :  { %3294 = vset.pattern.permute.xlu1 %v3701_v58 }
 0x758   :  { %v4003_v57 = vpack.c.bf16 %v3991_v52, %v3995_v50  ;;  %v4014_v24 = vpack.c.bf16 %v3999_v54, %v4007_v22 }
 0x7cd   :  { %v658_v4 = vpop.permute.xlu1 %657 }
 0x7ce   :  { %v660_v62 = vmul.f32 %v658_v4, %v648_v25 }
 0x7d0   :  { %v661_v47 = vpack.c.bf16 %v660_v62, %v660_v62 }
 0x7d1   :  { %v789_v55 = vpop.permute.xlu1 %788 }
 0x7d2   :  { %3161 = vmatmul.mubr.msk.bf16.vlgmr.msra.gmra.mxu1 %vm116_vm1, %v661_v47  ;;  %v795_v20 = vsel %vm116_vm1, %v783_v53, %v789_v55 }
 0x7d3   :  { %3173 = vmatpush3.bf16.msra.mxu1 %v3808_v27  ;;  %3180 = vmatprep.mubr.msk.bf16.mxu1 %vm441_vm3, %v792_v48 }
 0x7d4   :  { %3174 = vmatprep.subr.bf16.mxu1 %v3810_v28 }
 0x7d7   :  { %3175 = vmatpush3.bf16.msra.mxu1 %v3810_v28 }
 0x7d8   :  { %3176 = vmatprep.subr.bf16.mxu1 %v3839_v39 }
 0x7db   :  { %3177 = vmatpush3.bf16.msra.mxu1 %v3839_v39 }
 0x7dc   :  { %3178 = vmatprep.subr.bf16.mxu1 %v3843_v40 }
 0x7df   :  { %3179 = vmatpush3.bf16.msra.mxu1 %v3843_v40 }
 0x7e0   :  { %3200 = vmatprep.subr.bf16.mxu1 %v4003_v57 }
 0x7e2   :  { %3181 = vmatmul.mubr.msk.bf16.vlgmr.msra.gmra.mxu1 %vm441_vm3, %v795_v20 }
 0x7e3   :  { %3201 = vmatpush3.bf16.msra.mxu1 %v4003_v57  ;;  %3204 = vmatprep.mubr.msk.bf16.mxu1 %vm116_vm1, %v3786_v19 }
 0x7e4   :  { %3202 = vmatprep.subr.bf16.mxu1 %v4014_v24 }
 0x7e7   :  { %3203 = vmatpush3.bf16.msra.mxu1 %v4014_v24 }
 0x7e8   :  { %3220 = vmatprep.subr.bf16.mxu1 %v3696_v0 }
 0x7ea   :  { %3205 = vmatmul.mubr.msk.bf16.vlgmr.msra.gmra.mxu1 %vm116_vm1, %v3804_v26 }
 0x7eb   :  { %3224 = vmatprep.mubr.msk.bf16.mxu1 %vm3697_vm0, %v3696_v0 }
 0x892   :  { %v4026_v21 = vpop.f32.mrf.mxu1 }
 0x894   :  { %v3162_v59 = vpop.f32.mrf.mxu1 }
 0x896   :  { %v714_v61 = vpop.f32.mrf.mxu1 }
 0x898   :  { %v3163_v63 = vpop.f32.mrf.mxu1 }
 0x8a2   :  { %v3182_v1 = vpop.f32.mrf.mxu1 }
 0x8a3   :  { %v851_v9 = vadd.f32 %v3182_v1, %v3887_v60 }
 0x8a4   :  { %v834_v7 = vpop.f32.mrf.mxu1 }
 0x8a5   :  { %v849_v19 = vadd.f32 %v834_v7, %v3887_v60 }
 0x8a6   :  { %v3183_v56 = vpop.f32.mrf.mxu1 }
 0x8a7   :  { %855 = vperm.xlu0 %3281, %v849_v19   ;;  %v852_v26 = vadd.f32 %v3183_v56, %v3887_v60 }
 0x8a8   :  { %v837_v8 = vpop.f32.mrf.mxu1 }
 0x8a9   :  { %v850_v10 = vadd.f32 %v837_v8, %v3887_v60 }
 0x8ab   :  { %865 = vperm.xlu0 %3281, %v851_v9   ;;  %860 = vperm.xlu1 %3294, %v850_v10  }
 0x8af   :  { %870 = vperm.xlu1 %3294, %v852_v26  }
 0x922   :  { %v856_v12 = vpop.permute.xlu0 %855 }
 0x923   :  { %v873_v30 = vsel %vm3914_vm5, %v856_v12, -1e+30 }
 0x924   :  { %v877_v43 = vsel %vm527_vm8, %v873_v30, -inf }
 0x926   :  { %v866_v15 = vpop.permute.xlu0 %865  ;;  %v861_v25 = vpop.permute.xlu1 %860 }
 0x927   :  { %v874_v29 = vsel %vm3909_vm4, %v861_v25, -1e+30  ;;  %v875_v31 = vsel %vm3924_vm7, %v866_v15, -1e+30 }
 0x928   :  { %v878_v37 = vsel %vm527_vm8, %v874_v29, -inf  ;;  %v879_v2 = vsel %vm527_vm8, %v875_v31, -inf }
 0x929   :  { %v881_v44 = vmax.f32 %v877_v43, %v878_v37 }
 0x92a   :  { %v871_v38 = vpop.permute.xlu1 %870 }
 0x92b   :  { %v876_v42 = vsel %vm3918_vm6, %v871_v38, -1e+30 }
 0x92c   :  { %v880_v4 = vsel %vm527_vm8, %v876_v42, -inf }
 0x92d   :  { %v882_v62 = vmax.f32 %v879_v2, %v880_v4 }
 0x92f   :  { %v883_v3 = vmax.f32 %v881_v44, %v882_v62 }
 0x931   :  { %v884_v47 = vrot.slane %v883_v3, 4 }
 0x933   :  { %v885_v48 = vmax.f32 %v883_v3, %v884_v47 }
 0x935   :  { %v886_v53 = vrot.slane %v885_v48, 2 }
 0x937   :  { %v887_v55 = vmax.f32 %v885_v48, %v886_v53 }
 0x939   :  { %v888_v20 = vrot.slane %v887_v55, 1 }
 0x93b   :  { %v889_v59 = vmax.f32 %v887_v55, %v888_v20 }
 0x93d   :  { %v893_v61 = vsel %vm3918_vm6, %v889_v59, 0.0  ;;  %v892_v63 = vsel %vm3924_vm7, %v889_v59, 0.0  ;;  %v890_v56 = vsel %vm3914_vm5, %v889_v59, 0.0  ;;  %v891_v12 = vsel %vm3909_vm4, %v889_v59, 0.0 }
 0x93e   :  { %v903_v1 = vsel %vm527_vm8, %v893_v61, 0.0  ;;  %v900_v7 = vsel %vm527_vm8, %v892_v63, 0.0  ;;  %v894_v8 = vsel %vm527_vm8, %v890_v56, 0.0  ;;  %v897_v15 = vsel %vm527_vm8, %v891_v12, 0.0 }
 0x93f   :  { %904 = vadd.xlane.f32.xlu1 %v903_v1  ;;  %901 = vadd.xlane.f32.xlu0 %v900_v7 }
 0x943   :  { %895 = vadd.xlane.f32.xlu0 %v894_v8 }
 0x947   :  { %898 = vadd.xlane.f32.xlu0 %v897_v15 }
 0x9c8   :  { %v905_v25 = vpop.xlane.xlu1 %904  ;;  %v902_v29 = vpop.xlane.xlu0 %901 }
 0x9c9   :  { %v909_v30 = vsub.f32 %v852_v26, %v905_v25  ;;  %v908_v31 = vsub.f32 %v851_v9, %v902_v29 }
 0x9cb   :  { %v916_v37 = vmul.f32 1.442695, %v909_v30  ;;  %v914_v38 = vmul.f32 1.442695, %v908_v31 }
 0x9cc   :  { %v896_v42 = vpop.xlane.xlu0 %895 }
 0x9cd   :  { %3524 = vpow2.f32 %v916_v37  ;;  %v906_v43 = vsub.f32 %v849_v19, %v896_v42 }
 0x9ce   :  { %3526 = vpow2.f32 %v914_v38 }
 0x9cf   :  { %v910_v2 = vmul.f32 1.442695, %v906_v43 }
 0x9d0   :  { %v899_v4 = vpop.xlane.xlu0 %898 }
 0x9d1   :  { %3528 = vpow2.f32 %v910_v2  ;;  %v907_v44 = vsub.f32 %v850_v10, %v899_v4 }
 0x9d3   :  { %v912_v62 = vmul.f32 1.442695, %v907_v44  ;;  %v3206_v44 = vpop.f32.mrf.mxu1 }
 0x9d5   :  { %3530 = vpow2.f32 %v912_v62  ;;  %v1100_v62 = vpop.f32.mrf.mxu1 }
 0x9da   :  { %v3525_v3 = vpop.eup %3524 }
 0x9db   :  { %v3527_v47 = vpop.eup %3526  ;;  %935 = vperm.xlu0 %3281, %v3525_v3  }
 0x9dc   :  { %930 = vperm.xlu1 %3294, %v3527_v47   ;;  %v3295_v48 = vpack.i.bf16 %v3525_v3, %v3527_v47  ;;  %v3207_v3 = vpop.f32.mrf.mxu1 }
 0x9de   :  { %v3529_v53 = vpop.eup %3528  ;;  %v1103_v47 = vpop.f32.mrf.mxu1 }
 0x9df   :  { %3296 = vrot.lane.b32.xlu0 %v3295_v48, %s3699_s17 }
 0x9e0   :  { %920 = vperm.xlu1 %3294, %v3529_v53   ;;  %3305 = vset.pattern.permute.xlu0 %v3702_v17 }
 0x9e2   :  { %v3531_v9 = vpop.eup %3530 }
 0x9e3   :  { %v3300_v19 = vpack.i.bf16 %v3531_v9, %v3529_v53  ;;  %v1115_v53 = vpack.c.bf16 %v1103_v47, %v1100_v62 }
 0x9e4   :  { %925 = vperm.xlu1 %3294, %v3531_v9  }
 0x9e8   :  { %3301 = vrot.lane.b32.xlu1 %v3300_v19, %s3699_s17 }
 0x9ec   :  { %1119 = vrot.lane.b32.xlu1 %v4014_v24, %s3699_s17 }
 0x9f0   :  { %1121 = vrot.lane.b32.xlu1 %v4003_v57, %s3699_s17 }
 0xa56   :  { %v936_v10 = vpop.permute.xlu0 %935 }
 0xa57   :  { %v931_v26 = vpop.permute.xlu1 %930  ;;  %v941_v59 = vmul.f32 %v936_v10, %v3854_v46 }
 0xa58   :  { %v940_v20 = vmul.f32 %v931_v26, %v3851_v45 }
 0xa5a   :  { %v3297_v55 = vpop.permute.xlu0 %3296 }
 0xa5b   :  { %v921_v61 = vpop.permute.xlu1 %920  ;;  %v3299_v63 = vunpack.i.h.bf16 %v3297_v55  ;;  %v3298_v1 = vunpack.i.l.bf16 %v3297_v55  ;;  %v1116_v55 = vpack.c.bf16 %v3207_v3, %v3206_v44 }
 0xa5c   :  { %v938_v24 = vmul.f32 %v921_v61, %v3857_v49 }
 0xa5d   :  { %v957_v7 = vsel %vm116_vm1, %v941_v59, %v3299_v63  ;;  %v956_v56 = vsel %vm116_vm1, %v940_v20, %v3298_v1 }
 0xa5e   :  { %v959_v8 = vpack.c.bf16 %v957_v7, %v956_v56 }
 0xa5f   :  { %v926_v12 = vpop.permute.xlu1 %925 }
 0xa60   :  { %3185 = vmatpush3.bf16.msra.mxu0 %v959_v8  ;;  %v939_v15 = vmul.f32 %v926_v12, %v3860_v51 }
 0xa61   :  { %3186 = vmatprep.subr.bf16.mxu0 %v3696_v0 }
 0xa63   :  { %v3302_v57 = vpop.permute.xlu1 %3301 }
 0xa64   :  { %v3304_v25 = vunpack.i.h.bf16 %v3302_v57  ;;  %v3303_v29 = vunpack.i.l.bf16 %v3302_v57 }
 0xa66   :  { %v955_v30 = vsel %vm116_vm1, %v939_v15, %v3304_v25  ;;  %v954_v31 = vsel %vm116_vm1, %v938_v24, %v3303_v29 }
 0xa67   :  { %v958_v37 = vpack.c.bf16 %v955_v30, %v954_v31  ;;  %v1120_v19 = vpop.permute.xlu1 %1119 }
 0xa68   :  { %v1125_v26 = vsel %vm116_vm1, %v1115_v53, %v1120_v19 }
 0xa69   :  { %3187 = vmatpush3.bf16.msra.mxu0 %v958_v37 }
 0xa6a   :  { %3192 = vmatprep.subr.bf16.mxu0 %v3696_v0 }
 0xa6b   :  { %v1122_v20 = vpop.permute.xlu1 %1121 }
 0xa6c   :  { %3189 = vmatmul.mubr.msk.bf16.vlgmr.msra.gmra.mxu0 %vm116_vm1, %v3964_v16  ;;  %v1128_v59 = vsel %vm116_vm1, %v1116_v55, %v1122_v20 }
 0xa6d   :  { %3193 = vmatpush3.bf16.msra.mxu0 %v3972_v23  ;;  %3196 = vmatprep.mubr.msk.bf16.mxu0 %vm3697_vm0, %v3696_v0 }
 0xa6e   :  { %3194 = vmatprep.subr.bf16.mxu0 %v3696_v0 }
 0xa71   :  { %3195 = vmatpush3.bf16.msra.mxu0 %v3976_v34 }
 0xa72   :  { %3208 = vmatprep.subr.bf16.mxu0 %v3808_v27 }
 0xb2c   :  { %v994_v38 = vpop.f32.mrf.mxu0 }
 0xb2d   :  { %3532 = vrcp.f32 %v994_v38 }
 0xb2e   :  { %v3190_v42 = vpop.f32.mrf.mxu0 }
 0xb30   :  { %v997_v43 = vpop.f32.mrf.mxu0 }
 0xb32   :  { %v3191_v2 = vpop.f32.mrf.mxu0 }
 0xb3a   :  { %v3533_v4 = vpop.eup %3532 }
 0xb3b   :  { %1003 = vperm.xlu0 %3305, %v3533_v4  }
 0xb3f   :  { %3306 = vset.pattern.permute.xlu0 %v3701_v58 }
 0xbb6   :  { %v1004_v48 = vpop.permute.xlu0 %1003 }
 0xbb7   :  { %v1006_v9 = vmul.f32 %v1004_v48, %v994_v38 }
 0xbb9   :  { %v1007_v10 = vpack.c.bf16 %v1006_v9, %v1006_v9 }
 0xbbb   :  { %3197 = vmatmul.mubr.msk.bf16.vlgmr.msra.gmra.mxu0 %vm116_vm1, %v1007_v10 }
 0xbbc   :  { %3209 = vmatpush3.bf16.msra.mxu0 %v3808_v27  ;;  %3216 = vmatprep.mubr.msk.bf16.mxu0 %vm441_vm3, %v1125_v26 }
 0xbbd   :  { %3210 = vmatprep.subr.bf16.mxu0 %v3810_v28 }
 0xbc0   :  { %3211 = vmatpush3.bf16.msra.mxu0 %v3810_v28 }
 0xbc1   :  { %3212 = vmatprep.subr.bf16.mxu0 %v3839_v39 }
 0xbc4   :  { %3213 = vmatpush3.bf16.msra.mxu0 %v3839_v39 }
 0xbc5   :  { %3214 = vmatprep.subr.bf16.mxu0 %v3843_v40 }
 0xbc8   :  { %3215 = vmatpush3.bf16.msra.mxu0 %v3843_v40 }
 0xbcb   :  { %3217 = vmatmul.mubr.msk.bf16.vlgmr.msra.gmra.mxu0 %vm441_vm3, %v1128_v59 }
 0xbcc   :  { %3238 = vmatprep.mubr.msk.bf16.mxu0 %vm527_vm8, %v3899_v5 }
 0xc7b   :  { %v4094_v27 = vpop.f32.mrf.mxu0 }
 0xc7d   :  { %v3198_v61 = vpop.f32.mrf.mxu0 }
 0xc7f   :  { %v1048_v63 = vpop.f32.mrf.mxu0 }
 0xc81   :  { %v3199_v1 = vpop.f32.mrf.mxu0 }
 0xc8b   :  { %v3218_v28 = vpop.f32.mrf.mxu0 }
 0xc8c   :  { %v1184_v57 = vadd.f32 %v3218_v28, %v3887_v60 }
 0xc8d   :  { %v1167_v7 = vpop.f32.mrf.mxu0 }
 0xc8e   :  { %v1182_v56 = vadd.f32 %v1167_v7, %v3887_v60 }
 0xc8f   :  { %v3219_v39 = vpop.f32.mrf.mxu0 }
 0xc90   :  { %1188 = vperm.xlu0 %3306, %v1182_v56   ;;  %v1185_v12 = vadd.f32 %v3219_v39, %v3887_v60 }
 0xc91   :  { %v1170_v8 = vpop.f32.mrf.mxu0 }
 0xc92   :  { %v1183_v40 = vadd.f32 %v1170_v8, %v3887_v60 }
 0xc94   :  { %1203 = vperm.xlu0 %3306, %v1185_v12   ;;  %1193 = vperm.xlu1 %3294, %v1183_v40  }
 0xc98   :  { %1198 = vperm.xlu1 %3294, %v1184_v57  }
 0xd0b   :  { %v1189_v24 = vpop.permute.xlu0 %1188 }
 0xd0c   :  { %v1206_v30 = vsel %vm3914_vm5, %v1189_v24, -1e+30 }
 0xd0d   :  { %v1210_v60 = vsel %vm527_vm8, %v1206_v30, -inf }
 0xd0f   :  { %v1204_v15 = vpop.permute.xlu0 %1203  ;;  %v1194_v25 = vpop.permute.xlu1 %1193 }
 0xd10   :  { %v1207_v29 = vsel %vm3909_vm4, %v1194_v25, -1e+30  ;;  %v1209_v31 = vsel %vm3918_vm6, %v1204_v15, -1e+30 }
 0xd11   :  { %v1211_v37 = vsel %vm527_vm8, %v1207_v29, -inf  ;;  %v1213_v43 = vsel %vm527_vm8, %v1209_v31, -inf }
 0xd12   :  { %v1214_v4 = vmax.f32 %v1210_v60, %v1211_v37 }
 0xd13   :  { %v1199_v38 = vpop.permute.xlu1 %1198 }
 0xd14   :  { %v1208_v42 = vsel %vm3924_vm7, %v1199_v38, -1e+30 }
 0xd15   :  { %v1212_v2 = vsel %vm527_vm8, %v1208_v42, -inf  ;;  %v718_v42 = vlaneseq }
 0xd16   :  { %v1215_v44 = vmax.f32 %v1212_v2, %v1213_v43  ;;  %v4136_v2 = vld [vmem:[#allocation10 + $0x20] sm:$0x7] }
 0xd17   :  { %v4131_v60 = vshrl.u32 %v718_v42, 7 }
 0xd18   :  { %v1216_v62 = vmax.f32 %v1214_v4, %v1215_v44 }
 0xd19   :  { %v4134_v43 = vsub.s32 0, %v4131_v60 }
 0xd1a   :  { %v1217_v3 = vrot.slane %v1216_v62, 4 }
 0xd1b   :  { %v721_v4 = vrot.slane %v4136_v2, %v4134_v43 }
 0xd1c   :  { %v1218_v47 = vmax.f32 %v1216_v62, %v1217_v3 }
 0xd1e   :  { %v1219_v48 = vrot.slane %v1218_v47, 2 }
 0xd20   :  { %v1220_v53 = vmax.f32 %v1218_v47, %v1219_v48 }
 0xd22   :  { %v1221_v9 = vrot.slane %v1220_v53, 1 }
 0xd24   :  { %v1222_v19 = vmax.f32 %v1220_v53, %v1221_v9 }
 0xd26   :  { %v1226_v10 = vsel %vm3918_vm6, %v1222_v19, 0.0  ;;  %v1225_v26 = vsel %vm3924_vm7, %v1222_v19, 0.0  ;;  %v1224_v59 = vsel %vm3909_vm4, %v1222_v19, 0.0  ;;  %v1223_v61 = vsel %vm3914_vm5, %v1222_v19, 0.0 }
 0xd27   :  { %v1236_v55 = vsel %vm527_vm8, %v1226_v10, 0.0  ;;  %v1233_v20 = vsel %vm527_vm8, %v1225_v26, 0.0  ;;  %v1230_v63 = vsel %vm527_vm8, %v1224_v59, 0.0  ;;  %v1227_v14 = vsel %vm527_vm8, %v1223_v61, 0.0 }
 0xd28   :  { %1237 = vadd.xlane.f32.xlu0 %v1236_v55  ;;  %1234 = vadd.xlane.f32.xlu1 %v1233_v20 }
 0xd2c   :  { %1231 = vadd.xlane.f32.xlu1 %v1230_v63  ;;  %1228 = vadd.xlane.f32.xlu0 %v1227_v14 }
 0xdb1   :  { %v1238_v18 = vpop.xlane.xlu0 %1237  ;;  %v1235_v1 = vpop.xlane.xlu1 %1234 }
 0xdb2   :  { %v1242_v28 = vsub.f32 %v1185_v12, %v1238_v18  ;;  %v1241_v7 = vsub.f32 %v1184_v57, %v1235_v1 }
 0xdb4   :  { %v1249_v39 = vmul.f32 1.442695, %v1242_v28  ;;  %v1247_v8 = vmul.f32 1.442695, %v1241_v7 }
 0xdb5   :  { %v1232_v24 = vpop.xlane.xlu1 %1231  ;;  %v1229_v15 = vpop.xlane.xlu0 %1228 }
 0xdb6   :  { %3534 = vpow2.f32 %v1249_v39  ;;  %v1240_v11 = vsub.f32 %v1183_v40, %v1232_v24  ;;  %v1239_v25 = vsub.f32 %v1182_v56, %v1229_v15  ;;  %v4127_v56 = vld [vmem:[#allocation10 + $0x17] ss:$0 sm:$0xff] }
 0xdb7   :  { %3536 = vpow2.f32 %v1247_v8  ;;  %v712_v40 = vadd.f32 %v4026_v21, %v4127_v56 }
 0xdb8   :  { %v1245_v13 = vmul.f32 1.442695, %v1240_v11  ;;  %v1243_v29 = vmul.f32 1.442695, %v1239_v25 }
 0xdba   :  { %3538 = vpow2.f32 %v1245_v13 }
 0xdbb   :  { %3540 = vpow2.f32 %v1243_v29 }
 0xdbc   :  { %3542 = vtanh.f32 %v712_v40 }
 0xdc3   :  { %v3535_v30 = vpop.eup %3534 }
 0xdc4   :  { %v3537_v31 = vpop.eup %3536  ;;  %1268 = vperm.xlu1 %3294, %v3535_v30  }
 0xdc5   :  { %1263 = vperm.xlu0 %3306, %v3537_v31   ;;  %v3307_v57 = vpack.i.bf16 %v3535_v30, %v3537_v31 }
 0xdc7   :  { %v3539_v37 = vpop.eup %3538 }
 0xdc8   :  { %v3541_v38 = vpop.eup %3540 }
 0xdc9   :  { %1258 = vperm.xlu0 %3306, %v3539_v37   ;;  %1253 = vperm.xlu1 %3294, %v3541_v38   ;;  %v3312_v12 = vpack.i.bf16 %v3539_v37, %v3541_v38  ;;  %v3543_v44 = vpop.eup %3542 }
 0xdca   :  { %v722_v62 = vmul.f32 %v3543_v44, %v721_v4  ;;  %v1387_v4 = vsub.s32 2, %v4131_v60 }
 0xdcc   :  { %v1388_v44 = vrot.slane %v4136_v2, %v1387_v4 }
 0xdcd   :  { %3313 = vrot.lane.b32.xlu0 %v3312_v12, %s3699_s17  ;;  %3308 = vrot.lane.b32.xlu1 %v3307_v57, %s3699_s17 }
 0xdce   :  { %3317 = vset.pattern.permute.xlu1 %v3702_v17  ;;  %v724_v17 = vsel %vm723_vm9, %v722_v62, 0.0 }
 0xdec   :  { %725 = vadd.xlane.f32.xlu0 %v724_v17 }
 0xe3f   :  { %v1269_v3 = vpop.permute.xlu1 %1268 }
 0xe40   :  { %v1264_v21 = vpop.permute.xlu0 %1263  ;;  %v1274_v53 = vmul.f32 %v1269_v3, %v3991_v52 }
 0xe41   :  { %v1273_v9 = vmul.f32 %v1264_v21, %v3995_v50 }
 0xe44   :  { %v1254_v47 = vpop.permute.xlu1 %1253  ;;  %v1259_v48 = vpop.permute.xlu0 %1258 }
 0xe45   :  { %v1271_v61 = vmul.f32 %v1254_v47, %v4007_v22  ;;  %v1272_v63 = vmul.f32 %v1259_v48, %v3999_v54 }
 0xe48   :  { %v3309_v19 = vpop.permute.xlu1 %3308  ;;  %v3314_v10 = vpop.permute.xlu0 %3313 }
 0xe49   :  { %v3311_v26 = vunpack.i.h.bf16 %v3309_v19  ;;  %v3310_v55 = vunpack.i.l.bf16 %v3309_v19  ;;  %v3316_v20 = vunpack.i.h.bf16 %v3314_v10  ;;  %v3315_v59 = vunpack.i.l.bf16 %v3314_v10 }
 0xe4b   :  { %v1290_v14 = vsel %vm116_vm1, %v1274_v53, %v3311_v26  ;;  %v1289_v18 = vsel %vm116_vm1, %v1273_v9, %v3310_v55  ;;  %v1288_v28 = vsel %vm116_vm1, %v1272_v63, %v3316_v20  ;;  %v1287_v7 = vsel %vm116_vm1, %v1271_v61, %v3315_v59 }
 0xe4c   :  { %v1292_v1 = vpack.c.bf16 %v1290_v14, %v1289_v18  ;;  %v1291_v39 = vpack.c.bf16 %v1288_v28, %v1287_v7  ;;  %v3703_v20 = vmov 1  }
 0xe4e   :  { %3221 = vmatpush3.bf16.msra.mxu1 %v1292_v1  ;;  %v3704_v1 = vmov 2  }
 0xe4f   :  { %3222 = vmatprep.subr.bf16.mxu1 %v3696_v0 }
 0xe52   :  { %3223 = vmatpush3.bf16.msra.mxu1 %v1291_v39 }
 0xe53   :  { %3228 = vmatprep.subr.bf16.mxu1 %v3696_v0 }
 0xe55   :  { %3225 = vmatmul.mubr.msk.bf16.vlgmr.msra.gmra.mxu1 %vm116_vm1, %v3964_v16  ;;  %v1046_v16 = vadd.f32 %v4094_v27, %v4127_v56 }
 0xe56   :  { %3229 = vmatpush3.bf16.msra.mxu1 %v3972_v23  ;;  %3232 = vmatprep.mubr.msk.bf16.mxu1 %vm3697_vm0, %v3696_v0  ;;  %v4162_v23 = vsub.s32 1, %v4131_v60 }
 0xe57   :  { %3230 = vmatprep.subr.bf16.mxu1 %v3696_v0 }
 0xe58   :  { %v1055_v13 = vrot.slane %v4136_v2, %v4162_v23 }
 0xe5a   :  { %3231 = vmatpush3.bf16.msra.mxu1 %v3976_v34 }
 0xe5b   :  { %3242 = vmatprep.subr.bf16.mxu1 %v3696_v0 }
 0xe75   :  { %v726_v21 = vpop.xlane.xlu0 %725 }
 0xf15   :  { %v1327_v8 = vpop.f32.mrf.mxu1 }
 0xf16   :  { %3544 = vrcp.f32 %v1327_v8 }
 0xf17   :  { %v3226_v24 = vpop.f32.mrf.mxu1  ;;  %3546 = vtanh.f32 %v1046_v16 }
 0xf19   :  { %v1330_v15 = vpop.f32.mrf.mxu1 }
 0xf1b   :  { %v3227_v11 = vpop.f32.mrf.mxu1 }
 0xf23   :  { %v3545_v25 = vpop.eup %3544 }
 0xf24   :  { %1336 = vperm.xlu1 %3317, %v3545_v25   ;;  %v3547_v34 = vpop.eup %3546 }
 0xf25   :  { %v1056_v29 = vmul.f32 %v3547_v34, %v1055_v13 }
 0xf27   :  { %v1057_v30 = vsel %vm723_vm9, %v1056_v29, 0.0 }
 0xf28   :  { %3318 = vset.pattern.permute.xlu1 %v3703_v20 }
 0xf48   :  { %1058 = vadd.xlane.f32.xlu1 %v1057_v30 }
 0xf9f   :  { %v1337_v31 = vpop.permute.xlu1 %1336 }
 0xfa0   :  { %v1339_v37 = vmul.f32 %v1337_v31, %v1327_v8 }
 0xfa2   :  { %v1340_v38 = vpack.c.bf16 %v1339_v37, %v1339_v37 }
 0xfa4   :  { %3233 = vmatmul.mubr.msk.bf16.vlgmr.msra.gmra.mxu1 %vm116_vm1, %v1340_v38 }
 0xfa5   :  { %3246 = vmatprep.mubr.msk.bf16.mxu1 %vm3697_vm0, %v3696_v0 }
 0xfd1   :  { %v1059_v47 = vpop.xlane.xlu1 %1058 }
 0xfd2   :  { %v1394_v48 = vsel %vm1393_vm10, %v726_v21, %v1059_v47  ;;  %v3352_v47 = vld [vmem:[#allocation8 + $0x120] ss:$8 sps:$4 sm:$0xff]  }
0x1064   :  { %v1378_v27 = vpop.f32.mrf.mxu1 }
0x1065   :  { %v1379_v12 = vadd.f32 %v1378_v27, %v4127_v56 }
0x1066   :  { %v3234_v57 = vpop.f32.mrf.mxu1 }
0x1067   :  { %3548 = vtanh.f32 %v1379_v12 }
0x1068   :  { %v1381_v40 = vpop.f32.mrf.mxu1 }
0x106a   :  { %v3235_v42 = vpop.f32.mrf.mxu1 }
0x1074   :  { %v3549_v62 = vpop.eup %3548 }
0x1075   :  { %v1389_v17 = vmul.f32 %v3549_v62, %v1388_v44 }
0x1077   :  { %v1390_v3 = vsel %vm723_vm9, %v1389_v17, 0.0 }
0x1078   :  { %1391 = vadd.xlane.f32.xlu0 %v1390_v3 }
0x1101   :  { %v1392_v53 = vpop.xlane.xlu0 %1391 }
0x1102   :  { %v1395_v56 = vsel %vm527_vm8, %v1394_v48, %v1392_v53  ;;  %v3705_v48 = vmov 4   ;;  %v3357_v53 = vld [vmem:[#allocation8 + $0x114] ss:$8 sps:$4 sm:$0xff]  }
0x1103   :  { %v1396_v9 = vadd.f32 %v1395_v56, %v3847_v41  ;;  %v4200_v56 = vld [vmem:[#allocation10 + $0x23] ss:$0 sm:$0xff] }
0x1105   :  { %v1398_v19 = vsel %vm1397_vm11, %v1396_v9, -inf }
0x1106   :  { %1399 = vmax.xlane.f32.xlu0 %v1398_v19  ;;  %v3360_v19 = vld [vmem:[#allocation8 + $0x104] ss:$8 sps:$4 sm:$0xff]  }
0x118f   :  { %v1400_v60 = vpop.xlane.xlu0 %1399 }
0x1190   :  { %v1401_v10 = vsub.f32 %v1396_v9, %v1400_v60  ;;  %v3355_v9 = vld [vmem:[#allocation8 + $0x110] ss:$8 sps:$4 sm:$0xff]   ;;  %v3358_v60 = vld [vmem:[#allocation8 + $0x100] ss:$8 sps:$4 sm:$0xff]  }
0x1192   :  { %v1402_v2 = vmul.f32 1.442695, %v1401_v10  ;;  %v3363_v10 = vld [vmem:[#allocation8 + $0xf4] ss:$8 sps:$4 sm:$0xff]  }
0x1194   :  { %3550 = vpow2.f32 %v1402_v2  ;;  %v3361_v2 = vld [vmem:[#allocation8 + $0xf0] ss:$8 sps:$4 sm:$0xff]  }
0x11a1   :  { %v3551_v26 = vpop.eup %3550 }
0x11a2   :  { %v1404_v55 = vsel %vm1397_vm11, %v3551_v26, 0.0 }
0x11a3   :  { %1405 = vadd.xlane.f32.xlu1 %v1404_v55  ;;  %v3364_v55 = vld [vmem:[#allocation8 + $0xe0] ss:$8 sps:$4 sm:$0xff]  }
0x122c   :  { %v1406_v59 = vpop.xlane.xlu1 %1405 }
0x122d   :  { %3552 = vrcp.f32 %v1406_v59  ;;  %v3367_v59 = vld [vmem:[#allocation8 + $0xd0] ss:$8 sps:$4 sm:$0xff]  }
0x123a   :  { %v3553_v61 = vpop.eup %3552 }
0x123b   :  { %v1408_v63 = vmul.f32 %v3553_v61, %v3551_v26  ;;  %v3366_v26 = vld [vmem:[#allocation8 + $0xe4] ss:$8 sps:$4 sm:$0xff]  }
0x123c   :  { %v3372_v61 = vld [vmem:[#allocation8 + $0xc4] ss:$8 sps:$4 sm:$0xff]  }
0x123d   :  { %v1409_v41 = vpack.c.bf16 %v1408_v63, %v1408_v63  ;;  %v3370_v63 = vld [vmem:[#allocation8 + $0xc0] ss:$8 sps:$4 sm:$0xff]  }
0x123f   :  { %3250 = vmatprep.subr.msk.bf16.mxu0 %vm1426_vm12, %v1409_v41  ;;  %v1428_v14 = vsel %vm1426_vm12, %v1409_v41, 0  ;;  %v3375_v41 = vld [vmem:[#allocation8 + $0xb4] ss:$8 sps:$4 sm:$0xff]  }
0x1240   :  { %3237 = vmatpush3.bf16.msra.mxu0 %v1428_v14  ;;  %v3373_v14 = vld [vmem:[#allocation8 + $0xb0] ss:$8 sps:$4 sm:$0xff]  }
0x1243   :  { %3239 = vmatmul.mubr.msk.bf16.vlgmr.msra.gmra.mxu0 %vm527_vm8, %v3904_v6 }
0x1244   :  { %1685 = vmatprep.mubr.bf16.mxu0 %v3701_v58 }
0x1303   :  { %v3240_v18 = vpop.f32.mrf.mxu0 }
0x1304   :  { %1512 = vperm.xlu1 %3318, %v3240_v18   ;;  %1491 = vperm.xlu0 %3306, %v3240_v18  }
0x1305   :  { %v1464_v5 = vpop.f32.mrf.mxu0 }
0x1307   :  { %v3241_v28 = vpop.f32.mrf.mxu0 }
0x1308   :  { %3319 = vset.pattern.permute.xlu1 %v3704_v1  ;;  %1481 = vperm.xlu0 %3306, %v1464_v5  }
0x1309   :  { %1536 = vperm.xlu1 %3319, %v3240_v18   ;;  %v1467_v7 = vpop.f32.mrf.mxu0  ;;  %v3378_v18 = vld [vmem:[#allocation8 + $0x1a4] ss:$8 sps:$4 sm:$0xff]  }
0x130c   :  { %3322 = vset.pattern.permute.xlu0 %v3703_v20 }
0x130d   :  { %3320 = vset.pattern.permute.xlu1 %v3703_v20  ;;  %1516 = vperm.xlu0 %3322, %v3241_v28   ;;  %v3369_v20 = vld [vmem:[#allocation8 + $0xd4] ss:$8 sps:$4 sm:$0xff]  }
0x130e   :  { %1504 = vperm.xlu1 %3320, %v1464_v5  }
0x1311   :  { %1508 = vperm.xlu0 %3322, %v1467_v7  }
0x1312   :  { %3321 = vset.pattern.permute.xlu1 %v3701_v58 }
0x1313   :  { %1496 = vperm.xlu1 %3321, %v3241_v28  }
0x1315   :  { %3326 = vset.pattern.permute.xlu0 %v3705_v48  ;;  %v3423_v48 = vld [vmem:[#allocation8 + $0x1b4] ss:$8 sps:$4 sm:$0xff]  }
0x1316   :  { %1735 = vperm.xlu0 %3326, %v4200_v56  }
0x1317   :  { %3323 = vset.pattern.permute.xlu1 %v3704_v1 }
0x1318   :  { %1540 = vperm.xlu1 %3323, %v3241_v28   ;;  %v3379_v28 = vld [vmem:[#allocation8 + $0x190] ss:$8 sps:$4 sm:$0xff]  }
0x131c   :  { %3324 = vset.pattern.permute.xlu1 %v3701_v58 }
0x131d   :  { %1486 = vperm.xlu1 %3324, %v1467_v7  }
0x1321   :  { %3325 = vset.pattern.permute.xlu1 %v3704_v1  ;;  %v3381_v1 = vld [vmem:[#allocation8 + $0x194] ss:$8 sps:$4 sm:$0xff]  }
0x1322   :  { %1528 = vperm.xlu1 %3325, %v1464_v5   ;;  %v3376_v5 = vld [vmem:[#allocation8 + $0x1a0] ss:$8 sps:$4 sm:$0xff]  }
0x1326   :  { %1532 = vperm.xlu1 %3325, %v1467_v7   ;;  %v3384_v7 = vld [vmem:[#allocation8 + $0x184] ss:$8 sps:$4 sm:$0xff]  }
0x137f   :  { %v1513_v6 = vpop.permute.xlu1 %1512  ;;  %v1492_v39 = vpop.permute.xlu0 %1491 }
0x1380   :  { %v1521_v16 = vmul.f32 %v1513_v6, %v3851_v45  ;;  %v1501_v13 = vmul.f32 %v1492_v39, %v3817_v32  ;;  %v3382_v6 = vld [vmem:[#allocation8 + $0x180] ss:$8 sps:$4 sm:$0xff]   ;;  %v3387_v39 = vld [vmem:[#allocation8 + $0x174] ss:$8 sps:$4 sm:$0xff]  }
0x1382   :  { %v1525_v31 = vadd.f32 %v1521_v16, %v1501_v13 }
0x1383   :  { %v1482_v24 = vpop.permute.xlu0 %1481 }
0x1384   :  { %v1537_v8 = vpop.permute.xlu1 %1536 }
0x1385   :  { %v1545_v29 = vmul.f32 %v1537_v8, %v3995_v50  ;;  %v3385_v8 = vld [vmem:[#allocation8 + $0x170] ss:$8 sps:$4 sm:$0xff]  }
0x1387   :  { %v1549_v27 = vadd.f32 %v1545_v29, %v1525_v31  ;;  %v3556_v29 = vld [vmem:[%s4275_s0 + $0x8] sm:$0xff] }
0x1388   :  { %v1517_v25 = vpop.permute.xlu0 %1516 }
0x1389   :  { %v1505_v15 = vpop.permute.xlu1 %1504  ;;  %v1522_v58 = vmul.f32 %v1517_v25, %v3854_v46  ;;  %v1499_v46 = vmul.f32 %v1482_v24, %v3823_v35  ;;  %v3348_v35 = vld [vmem:[#allocation8 + $0xa4] ss:$8 sps:$4 sm:$0xff]   ;;  %v1606_v25 = vld [vmem:[#allocation10] ss:$0 sm:$0xff] }
0x138a   :  { %1665 = vmatprep.subr.bf16.mxu0 %v3348_v35  ;;  %v3414_v35 = vld [vmem:[#allocation8 + $0x1e4] ss:$8 sps:$4 sm:$0xff]  }
0x138c   :  { %v1509_v45 = vpop.permute.xlu0 %1508 }
0x138d   :  { %v1520_v42 = vmul.f32 %v1509_v45, %v3860_v51  ;;  %v3351_v51 = vld [vmem:[#allocation8 + $0x94] ss:$8 sps:$4 sm:$0xff]  }
0x138e   :  { %v1497_v11 = vpop.permute.xlu1 %1496  ;;  %v3393_v45 = vld [vmem:[#allocation8 + $0x154] ss:$8 sps:$4 sm:$0xff]  }
0x138f   :  { %v1502_v34 = vmul.f32 %v1497_v11, %v3820_v33  ;;  %v1519_v33 = vmul.f32 %v1505_v15, %v3857_v49  ;;  %v3345_v49 = vld [vmem:[%s4280_s5] sm:$0xff]  }
0x1390   :  { %v3555_v15 = vld [vmem:[%s4275_s0] sm:$0xff]  ;;  %s3709_s0 = smov [#allocation11]  }
0x1391   :  { %v1526_v37 = vadd.f32 %v1522_v58, %v1502_v34  ;;  %v1523_v44 = vadd.f32 %v1519_v33, %v1499_v46  ;;  %v3396_v33 = vld [vmem:[#allocation8 + $0x144] ss:$8 sps:$4 sm:$0xff]   ;;  %v3397_v46 = vld [vmem:[#allocation8 + $0x130] ss:$8 sps:$4 sm:$0xff]   ;;  %s2841_s6 = sshll.u32 %s3709_s0, 4  ;;  %s2842_s6 = int_to_ptr.vmem [resolvable:$true] %s2841_s6 }
0x1392   :  { %s3657_s26 = scalar_lea.vmem %s2842_s6, 256  ;;  %p3662_p12 = scmp.lt.s32.totalorder %s2842_s6, %s2842_s6 }
0x1393   :  { %v1541_v30 = vpop.permute.xlu1 %1540  ;;  %p3658_p11 = scmp.ne.s32.totalorder %s2842_s6, %s3657_s26  ;;  %p3663_p13 = scmp.lt.s32.totalorder %s3657_s26, %s3657_s26 }
0x1394   :  { %v1546_v38 = vmul.f32 %v1541_v30, %v3991_v52  ;;  %v1609_v30 = vld [vmem:[#allocation10 + $0x1] ss:$0 sm:$0xff] }
0x1395   :  { %p3664_p0 = por %p3663_p13, %p3662_p12 }
0x1396   :  { %v1550_v12 = vadd.f32 %v1546_v38, %v1526_v37 }
0x1397   :  { %p3665_p1 = pnand %p3664_p0, %p3658_p11 }
0x1398   :  { %v1554_v57 = vpack.c.bf16 %v1550_v12, %v1549_v27  ;;  %v1487_v40 = vpop.permute.xlu1 %1486 }
0x1399   :  { %v1500_v50 = vmul.f32 %v1487_v40, %v3826_v36  ;;  %v3346_v36 = vld [vmem:[#allocation8 + $0xa0] ss:$8 sps:$4 sm:$0xff]  }
0x139a   :  { %3243 = vmatpush3.bf16.msra.mxu1 %v1554_v57  ;;  %1666 = vmatpush1.bf16.msra.mxu0 %v3346_v36  ;;  %v3390_v57 = vld [vmem:[#allocation8 + $0x164] ss:$8 sps:$4 sm:$0xff]   ;;  %v3388_v40 = vld [vmem:[#allocation8 + $0x160] ss:$8 sps:$4 sm:$0xff]  }
0x139b   :  { %3244 = vmatprep.subr.bf16.mxu1 %v3696_v0  ;;  %v1524_v62 = vadd.f32 %v1520_v42, %v1500_v50  ;;  %1667 = vmatprep.subr.bf16.mxu0 %v3351_v51  ;;  %v3394_v50 = vld [vmem:[#allocation8 + $0x140] ss:$8 sps:$4 sm:$0xff]   ;;  %v3399_v42 = vld [vmem:[#allocation8 + $0x134] ss:$8 sps:$4 sm:$0xff]  }
0x139c   :  { %v3412_v36 = vld [vmem:[#allocation8 + $0x1e0] ss:$8 sps:$4 sm:$0xff]   ;;  %v3417_v51 = vld [vmem:[#allocation8 + $0x1d4] ss:$8 sps:$4 sm:$0xff]  }
0x139d   :  { %v1529_v32 = vpop.permute.xlu1 %1528 }
0x139e   :  { %v1543_v4 = vmul.f32 %v1529_v32, %v4007_v22  ;;  %v3349_v22 = vld [vmem:[#allocation8 + $0x90] ss:$8 sps:$4 sm:$0xff]  }
0x139f   :  { %1668 = vmatpush1.bf16.msra.mxu0 %v3349_v22  ;;  %v3391_v32 = vld [vmem:[#allocation8 + $0x150] ss:$8 sps:$4 sm:$0xff]  }
0x13a0   :  { %v1547_v3 = vadd.f32 %v1543_v4, %v1523_v44  ;;  %v3400_v4 = vld [vmem:[#allocation8 + $0x220] ss:$8 sps:$4 sm:$0xff]   ;;  %v3706_v44 = vmov 5   ;;  %v3415_v22 = vld [vmem:[#allocation8 + $0x1d0] ss:$8 sps:$4 sm:$0xff]  }
0x13a1   :  { %v1533_v52 = vpop.permute.xlu1 %1532  ;;  %3327 = vset.pattern.permute.xlu1 %v3706_v44  ;;  %v3441_v44 = vld [vmem:[#allocation8 + $0x254] ss:$8 sps:$4 sm:$0xff]  }
0x13a2   :  { %v1544_v17 = vmul.f32 %v1533_v52, %v3999_v54  ;;  %v3354_v54 = vld [vmem:[#allocation8 + $0x124] ss:$8 sps:$4 sm:$0xff]   ;;  %2035 = vperm.xlu1 %3327, %v4200_v56  }
0x13a3   :  { %v3402_v52 = vld [vmem:[#allocation8 + $0x224] ss:$8 sps:$4 sm:$0xff]  }
0x13a4   :  { %v1548_v21 = vadd.f32 %v1544_v17, %v1524_v62  ;;  %v3405_v62 = vld [vmem:[#allocation8 + $0x214] ss:$8 sps:$4 sm:$0xff]   ;;  %2253 = vmatprep.subr.bf16.mxu0 %v3402_v52  ;;  %v3403_v17 = vld [vmem:[#allocation8 + $0x210] ss:$8 sps:$4 sm:$0xff]   ;;  %v3436_v52 = vld [vmem:[#allocation8 + $0x260] ss:$8 sps:$4 sm:$0xff]  }
0x13a6   :  { %v1553_v0 = vpack.c.bf16 %v1548_v21, %v1547_v3  ;;  %v3408_v3 = vld [vmem:[#allocation8 + $0x204] ss:$8 sps:$4 sm:$0xff]   ;;  %v3406_v21 = vld [vmem:[#allocation8 + $0x200] ss:$8 sps:$4 sm:$0xff]  }
0x13a8   :  { %3245 = vmatpush3.bf16.msra.mxu1 %v1553_v0  ;;  %v3411_v0 = vld [vmem:[#allocation8 + $0x1f4] ss:$8 sps:$4 sm:$0xff]  }
0x13a9   :  { %1953 = vmatprep.subr.bf16.mxu1 %v3354_v54  ;;  %v3418_v54 = vld [vmem:[#allocation8 + $0x1c0] ss:$8 sps:$4 sm:$0xff]  }
0x13ab   :  { %3247 = vmatmul.mubr.msk.bf16.vlgmr.msra.gmra.mxu1 %vm116_vm1, %v3345_v49  ;;  %v3409_v49 = vld [vmem:[#allocation8 + $0x1f0] ss:$8 sps:$4 sm:$0xff]  }
0x13ac   :  { %1954 = vmatpush1.bf16.msra.mxu1 %v3352_v47  ;;  %v3420_v47 = vld [vmem:[#allocation8 + $0x1c4] ss:$8 sps:$4 sm:$0xff]  }
0x13ad   :  { %1955 = vmatprep.subr.bf16.mxu1 %v3357_v53  ;;  %v3421_v53 = vld [vmem:[#allocation8 + $0x1b0] ss:$8 sps:$4 sm:$0xff]  }
0x13b0   :  { %1956 = vmatpush1.bf16.msra.mxu1 %v3355_v9  ;;  %v3426_v9 = vld [vmem:[#allocation8 + $0x2a4] ss:$8 sps:$4 sm:$0xff]  }
0x13b1   :  { %1957 = vmatprep.subr.bf16.mxu1 %v3360_v19  ;;  %v3424_v19 = vld [vmem:[#allocation8 + $0x2a0] ss:$8 sps:$4 sm:$0xff]  }
0x13b4   :  { %1958 = vmatpush1.bf16.msra.mxu1 %v3358_v60  ;;  %v3429_v60 = vld [vmem:[#allocation8 + $0x294] ss:$8 sps:$4 sm:$0xff]  }
0x13b5   :  { %1959 = vmatprep.subr.bf16.mxu1 %v3363_v10  ;;  %v3427_v10 = vld [vmem:[#allocation8 + $0x290] ss:$8 sps:$4 sm:$0xff]  }
0x13b8   :  { %1960 = vmatpush1.bf16.msra.mxu1 %v3361_v2  ;;  %v3432_v2 = vld [vmem:[#allocation8 + $0x284] ss:$8 sps:$4 sm:$0xff]  }
0x13b9   :  { %1961 = vmatprep.subr.bf16.mxu1 %v3366_v26  ;;  %v3430_v26 = vld [vmem:[#allocation8 + $0x280] ss:$8 sps:$4 sm:$0xff]  }
0x13bc   :  { %1962 = vmatpush1.bf16.msra.mxu1 %v3364_v55  ;;  %v3435_v55 = vld [vmem:[#allocation8 + $0x274] ss:$8 sps:$4 sm:$0xff]  }
0x13bd   :  { %1963 = vmatprep.subr.bf16.mxu1 %v3369_v20  ;;  %v3433_v20 = vld [vmem:[#allocation8 + $0x270] ss:$8 sps:$4 sm:$0xff]  }
0x13c0   :  { %1964 = vmatpush1.bf16.msra.mxu1 %v3367_v59  ;;  %v1618_v59 = vld [vmem:[#allocation10 + $0x2] ss:$8 sm:$0x3] }
0x13c1   :  { %1965 = vmatprep.subr.bf16.mxu1 %v3372_v61  ;;  %v1623_v61 = vrot.slane %v1618_v59, %v4134_v43 }
0x13c4   :  { %1966 = vmatpush1.bf16.msra.mxu1 %v3370_v63  ;;  %v1697_v63 = vld [vmem:[#allocation10 + $0x3] ss:$8 sm:$0x3] }
0x13c5   :  { %1967 = vmatprep.subr.bf16.mxu1 %v3375_v41  ;;  %v1627_v41 = vrot.slane %v1618_v59, %v4162_v23  ;;  %v3474_v59 = vld [vmem:[#allocation8 + $0x3a4] ss:$8 sps:$4 sm:$0xff]  }
0x13c8   :  { %1968 = vmatpush1.bf16.msra.mxu1 %v3373_v14 }
0x13c9   :  { %1969 = vmatprep.subr.bf16.mxu1 %v3378_v18 }
0x13cc   :  { %1970 = vmatpush2.bf16.msra.mxu1 %v3376_v5  ;;  %v1702_v5 = vrot.slane %v1697_v63, %v4134_v43 }
0x13cd   :  { %1971 = vmatprep.subr.bf16.mxu1 %v3381_v1  ;;  %v1706_v1 = vrot.slane %v1697_v63, %v4162_v23  ;;  %v3477_v63 = vld [vmem:[#allocation8 + $0x394] ss:$8 sps:$4 sm:$0xff]  }
0x13d0   :  { %1972 = vmatpush2.bf16.msra.mxu1 %v3379_v28  ;;  %v1714_v28 = vld [vmem:[#allocation10 + $0x4] ss:$8 sm:$0x3] }
0x13d1   :  { %1973 = vmatprep.subr.bf16.mxu1 %v3384_v7 }
0x13d4   :  { %1974 = vmatpush2.bf16.msra.mxu1 %v3382_v6 }
0x13d5   :  { %1975 = vmatprep.subr.bf16.mxu1 %v3387_v39  ;;  %v1723_v39 = vrot.slane %v1714_v28, %v4162_v23 }
0x13d8   :  { %1976 = vmatpush2.bf16.msra.mxu1 %v3385_v8 }
0x13d9   :  { %1977 = vmatprep.subr.bf16.mxu1 %v3390_v57 }
0x13dc   :  { %1978 = vmatpush2.bf16.msra.mxu1 %v3388_v40 }
0x13dd   :  { %1979 = vmatprep.subr.bf16.mxu1 %v3393_v45 }
0x13e0   :  { %1980 = vmatpush2.bf16.msra.mxu1 %v3391_v32 }
0x13e1   :  { %1981 = vmatprep.subr.bf16.mxu1 %v3396_v33 }
0x13e4   :  { %1982 = vmatpush2.bf16.msra.mxu1 %v3394_v50 }
0x13e5   :  { %1983 = vmatprep.subr.bf16.mxu1 %v3399_v42 }
0x13e8   :  { %1984 = vmatpush2.bf16.msra.mxu1 %v3397_v46 }
0x146b   :  { %v1597_v24 = vpop.f32.mrf.mxu1 }
0x146c   :  { %v1604_v11 = vadd.f32 %v3555_v15, %v1597_v24  ;;  %v1719_v15 = vrot.slane %v1714_v28, %v4134_v43 }
0x146d   :  { %v3248_v16 = vpop.f32.mrf.mxu1 }
0x146e   :  { %v1607_v34 = vmul.f32 %v1606_v25, %v1604_v11 }
0x146f   :  { %v1600_v13 = vpop.f32.mrf.mxu1 }
0x1470   :  { %v1605_v58 = vadd.f32 %v3556_v29, %v1600_v13  ;;  %v1610_v38 = vadd.f32 %v1609_v30, %v1607_v34 }
0x1471   :  { %v3249_v31 = vpop.f32.mrf.mxu1 }
0x1472   :  { %v1608_v37 = vmul.f32 %v1606_v25, %v1605_v58  ;;  %v1736_v31 = vpop.permute.xlu0 %1735 }
0x1474   :  { %v1611_v27 = vadd.f32 %v1609_v30, %v1608_v37 }
0x1476   :  { %v1612_v12 = vpack.c.bf16 %v1611_v27, %v1610_v38 }
0x1478   :  { %2901 = vmatmul.mubr.msk.bf16.vlgmr.msra.gmra.mxu0 %vm116_vm1, %v1612_v12 }
0x1479   :  { %2254 = vmatpush1.bf16.msra.mxu0 %v3400_v4  ;;  %v3438_v4 = vld [vmem:[#allocation8 + $0x264] ss:$8 sps:$4 sm:$0xff]  }
0x147a   :  { %2255 = vmatprep.subr.bf16.mxu0 %v3405_v62  ;;  %v3439_v62 = vld [vmem:[#allocation8 + $0x250] ss:$8 sps:$4 sm:$0xff]  }
0x147d   :  { %2256 = vmatpush1.bf16.msra.mxu0 %v3403_v17  ;;  %v3444_v17 = vld [vmem:[#allocation8 + $0x244] ss:$8 sps:$4 sm:$0xff]  }
0x147e   :  { %2257 = vmatprep.subr.bf16.mxu0 %v3408_v3  ;;  %v3442_v3 = vld [vmem:[#allocation8 + $0x240] ss:$8 sps:$4 sm:$0xff]  }
0x1481   :  { %2258 = vmatpush1.bf16.msra.mxu0 %v3406_v21  ;;  %v3445_v21 = vld [vmem:[#allocation8 + $0x230] ss:$8 sps:$4 sm:$0xff]  }
0x1482   :  { %2259 = vmatprep.subr.bf16.mxu0 %v3411_v0  ;;  %v3447_v0 = vld [vmem:[#allocation8 + $0x234] ss:$8 sps:$4 sm:$0xff]  }
0x1485   :  { %2260 = vmatpush1.bf16.msra.mxu0 %v3409_v49  ;;  %v3448_v49 = vld [vmem:[#allocation8 + $0x320] ss:$8 sps:$4 sm:$0xff]  }
0x1486   :  { %2261 = vmatprep.subr.bf16.mxu0 %v3414_v35  ;;  %v3450_v35 = vld [vmem:[#allocation8 + $0x324] ss:$8 sps:$4 sm:$0xff]  }
0x1487   :  { %2561 = vmatprep.subr.bf16.mxu1 %v3450_v35 }
0x1489   :  { %2262 = vmatpush1.bf16.msra.mxu0 %v3412_v36  ;;  %v3707_v36 = vmov 6  }
0x148a   :  { %2263 = vmatprep.subr.bf16.mxu0 %v3417_v51  ;;  %3328 = vset.pattern.permute.xlu1 %v3707_v36  ;;  %v3453_v51 = vld [vmem:[#allocation8 + $0x314] ss:$8 sps:$4 sm:$0xff]  }
0x148b   :  { %2343 = vperm.xlu1 %3328, %v4200_v56   ;;  %v3483_v36 = vld [vmem:[#allocation8 + $0x374] ss:$8 sps:$4 sm:$0xff]  }
0x148d   :  { %2264 = vmatpush1.bf16.msra.mxu0 %v3415_v22  ;;  %v3451_v22 = vld [vmem:[#allocation8 + $0x310] ss:$8 sps:$4 sm:$0xff]  }
0x148e   :  { %2265 = vmatprep.subr.bf16.mxu0 %v3420_v47  ;;  %v3456_v47 = vld [vmem:[#allocation8 + $0x304] ss:$8 sps:$4 sm:$0xff]  }
0x1491   :  { %2266 = vmatpush1.bf16.msra.mxu0 %v3418_v54  ;;  %v3454_v54 = vld [vmem:[#allocation8 + $0x300] ss:$8 sps:$4 sm:$0xff]  }
0x1492   :  { %2267 = vmatprep.subr.bf16.mxu0 %v3423_v48  ;;  %v3459_v48 = vld [vmem:[#allocation8 + $0x2f4] ss:$8 sps:$4 sm:$0xff]  }
0x1495   :  { %2268 = vmatpush1.bf16.msra.mxu0 %v3421_v53  ;;  %v3457_v53 = vld [vmem:[#allocation8 + $0x2f0] ss:$8 sps:$4 sm:$0xff]  }
0x1496   :  { %2269 = vmatprep.subr.bf16.mxu0 %v3426_v9  ;;  %v3462_v9 = vld [vmem:[#allocation8 + $0x2e4] ss:$8 sps:$4 sm:$0xff]  }
0x1499   :  { %2270 = vmatpush2.bf16.msra.mxu0 %v3424_v19  ;;  %v3460_v19 = vld [vmem:[#allocation8 + $0x2e0] ss:$8 sps:$4 sm:$0xff]  }
0x149a   :  { %2271 = vmatprep.subr.bf16.mxu0 %v3429_v60  ;;  %v3465_v60 = vld [vmem:[#allocation8 + $0x2d4] ss:$8 sps:$4 sm:$0xff]  }
0x149d   :  { %2272 = vmatpush2.bf16.msra.mxu0 %v3427_v10  ;;  %v3463_v10 = vld [vmem:[#allocation8 + $0x2d0] ss:$8 sps:$4 sm:$0xff]  }
0x149e   :  { %2273 = vmatprep.subr.bf16.mxu0 %v3432_v2  ;;  %v3468_v2 = vld [vmem:[#allocation8 + $0x2c4] ss:$8 sps:$4 sm:$0xff]  }
0x14a1   :  { %2274 = vmatpush2.bf16.msra.mxu0 %v3430_v26  ;;  %v3466_v26 = vld [vmem:[#allocation8 + $0x2c0] ss:$8 sps:$4 sm:$0xff]  }
0x14a2   :  { %2275 = vmatprep.subr.bf16.mxu0 %v3435_v55  ;;  %v3471_v55 = vld [vmem:[#allocation8 + $0x2b4] ss:$8 sps:$4 sm:$0xff]  }
0x14a5   :  { %2276 = vmatpush2.bf16.msra.mxu0 %v3433_v20  ;;  %v3469_v20 = vld [vmem:[#allocation8 + $0x2b0] ss:$8 sps:$4 sm:$0xff]  }
0x14a6   :  { %2277 = vmatprep.subr.bf16.mxu0 %v3438_v4 }
0x14a9   :  { %2278 = vmatpush2.bf16.msra.mxu0 %v3436_v52 }
0x14aa   :  { %2279 = vmatprep.subr.bf16.mxu0 %v3441_v44 }
0x14ad   :  { %2280 = vmatpush2.bf16.msra.mxu0 %v3439_v62 }
0x14ae   :  { %2281 = vmatprep.subr.bf16.mxu0 %v3444_v17 }
0x14b1   :  { %2282 = vmatpush2.bf16.msra.mxu0 %v3442_v3 }
0x14b2   :  { %2283 = vmatprep.subr.bf16.mxu0 %v3447_v0 }
0x14b5   :  { %2284 = vmatpush2.bf16.msra.mxu0 %v3445_v21 }
0x1538   :  { %v1687_v14 = vpop.f32.mrf.mxu0 }
0x1539   :  { %v4213_v18 = vadd.f32 %v1687_v14, %v1623_v61  ;;  %v3480_v14 = vld [vmem:[#allocation8 + $0x384] ss:$8 sps:$4 sm:$0xff]  }
0x153a   :  { %v1689_v7 = vpop.f32.mrf.mxu0 }
0x153b   :  { %v4217_v6 = vadd.f32 %v1689_v7, %v1627_v41  ;;  %v1709_v24 = vmul.f32 %v1702_v5, %v4213_v18  ;;  %v1997_v7 = vld [vmem:[#allocation10 + $0x6] ss:$8 sm:$0x3] }
0x153c   :  { %v1691_v8 = vpop.f32.mrf.mxu0 }
0x153d   :  { %v1710_v11 = vmul.f32 %v1706_v1, %v4217_v6  ;;  %v4223_v25 = vadd.f32 %v1691_v8, %v1623_v61  ;;  %v1726_v58 = vadd.f32 %v1719_v15, %v1709_v24  ;;  %v3472_v61 = vld [vmem:[#allocation8 + $0x3a0] ss:$8 sps:$4 sm:$0xff]  }
0x153e   :  { %v1693_v16 = vpop.f32.mrf.mxu0 }
0x153f   :  { %v1711_v13 = vmul.f32 %v1702_v5, %v4223_v25  ;;  %v1727_v34 = vadd.f32 %v1723_v39, %v1710_v11  ;;  %v4226_v29 = vadd.f32 %v1693_v16, %v1627_v41  ;;  %v1738_v57 = vmul.f32 %v1736_v31, %v1726_v58  ;;  %v3475_v41 = vld [vmem:[#allocation8 + $0x390] ss:$8 sps:$4 sm:$0xff]   ;;  %v3478_v5 = vld [vmem:[#allocation8 + $0x380] ss:$8 sps:$4 sm:$0xff]  }
0x1540   :  { %vm1730_vm15 = vcmp.ge.f32.partialorder %v1726_v58, 0.0  ;;  %v2006_v11 = vrot.slane %v1997_v7, %v4162_v23  ;;  %v2014_v16 = vld [vmem:[#allocation10 + $0x7] ss:$8 sm:$0x3] }
0x1541   :  { %v1728_v30 = vadd.f32 %v1719_v15, %v1711_v13  ;;  %v1712_v37 = vmul.f32 %v1706_v1, %v4226_v29  ;;  %v1739_v27 = vmul.f32 %v1736_v31, %v1727_v34  ;;  %vm1731_vm14 = vcmp.ge.f32.partialorder %v1727_v34, 0.0  ;;  %v1781_v1 = vld [vmem:[#allocation10 + $0x5] ss:$8 sm:$0x3] }
0x1542   :  { %v1742_v46 = vsel %vm1730_vm15, %v1726_v58, %v1738_v57  ;;  %v1786_v28 = vrot.slane %v1781_v1, %v4134_v43  ;;  %v2002_v15 = vrot.slane %v1997_v7, %v4134_v43  ;;  %v2023_v58 = vrot.slane %v2014_v16, %v4162_v23 }
0x1543   :  { %v1740_v38 = vmul.f32 %v1736_v31, %v1728_v30  ;;  %vm1732_vm13 = vcmp.ge.f32.partialorder %v1728_v30, 0.0  ;;  %v1729_v12 = vadd.f32 %v1723_v39, %v1712_v37  ;;  %v1743_v32 = vsel %vm1731_vm14, %v1727_v34, %v1739_v27 }
0x1544   :  { %v1790_v39 = vrot.slane %v1781_v1, %v4162_v23  ;;  %v2019_v37 = vrot.slane %v2014_v16, %v4134_v43  ;;  %v2305_v1 = vld [vmem:[#allocation10 + $0x11] ss:$8 sm:$0x3] }
0x1545   :  { %v1741_v40 = vmul.f32 %v1736_v31, %v1729_v12  ;;  %vm1733_vm0 = vcmp.ge.f32.partialorder %v1729_v12, 0.0  ;;  %v1744_v45 = vsel %vm1732_vm13, %v1728_v30, %v1740_v38  ;;  %v2314_v16 = vrot.slane %v2305_v1, %v4162_v23 }
0x1546   :  { %v1746_v42 = vpack.c.bf16 %v1744_v45, %v1742_v46 }
0x1547   :  { %v1745_v33 = vsel %vm1733_vm0, %v1729_v12, %v1741_v40 }
0x1548   :  { %v1747_v50 = vpack.c.bf16 %v1745_v33, %v1743_v32 }
0x154a   :  { %1985 = vmatprep.mubr.bf16.mxu1 %v1747_v50  ;;  %v2036_v50 = vpop.permute.xlu1 %2035 }
0x154b   :  { %1986 = vmatmul.mubr.bf16.vlgmr.msra.gmra.mxu1 %v1746_v42 }
0x154c   :  { %2562 = vmatpush1.bf16.msra.mxu1 %v3448_v49 }
0x154d   :  { %2563 = vmatprep.subr.bf16.mxu1 %v3453_v51  ;;  %v3481_v51 = vld [vmem:[#allocation8 + $0x370] ss:$8 sps:$4 sm:$0xff]  }
0x1550   :  { %2564 = vmatpush1.bf16.msra.mxu1 %v3451_v22  ;;  %v3486_v22 = vld [vmem:[#allocation8 + $0x364] ss:$8 sps:$4 sm:$0xff]  }
0x1551   :  { %2565 = vmatprep.subr.bf16.mxu1 %v3456_v47  ;;  %v3484_v47 = vld [vmem:[#allocation8 + $0x360] ss:$8 sps:$4 sm:$0xff]  }
0x1554   :  { %2566 = vmatpush1.bf16.msra.mxu1 %v3454_v54  ;;  %v3489_v54 = vld [vmem:[#allocation8 + $0x354] ss:$8 sps:$4 sm:$0xff]  }
0x1555   :  { %2567 = vmatprep.subr.bf16.mxu1 %v3459_v48  ;;  %v3487_v48 = vld [vmem:[#allocation8 + $0x350] ss:$8 sps:$4 sm:$0xff]  }
0x1558   :  { %2568 = vmatpush1.bf16.msra.mxu1 %v3457_v53  ;;  %v3492_v53 = vld [vmem:[#allocation8 + $0x344] ss:$8 sps:$4 sm:$0xff]  }
0x1559   :  { %2569 = vmatprep.subr.bf16.mxu1 %v3462_v9  ;;  %v3490_v9 = vld [vmem:[#allocation8 + $0x340] ss:$8 sps:$4 sm:$0xff]  }
0x155c   :  { %2570 = vmatpush1.bf16.msra.mxu1 %v3460_v19  ;;  %v3493_v19 = vld [vmem:[#allocation8 + $0x330] ss:$8 sps:$4 sm:$0xff]  }
0x155d   :  { %2571 = vmatprep.subr.bf16.mxu1 %v3465_v60  ;;  %v3495_v60 = vld [vmem:[#allocation8 + $0x334] ss:$8 sps:$4 sm:$0xff]  }
0x1560   :  { %2572 = vmatpush1.bf16.msra.mxu1 %v3463_v10  ;;  %v3496_v10 = vld [vmem:[#allocation8 + $0x4a0] ss:$8 sps:$4 sm:$0xff]  }
0x1561   :  { %2573 = vmatprep.subr.bf16.mxu1 %v3468_v2  ;;  %v3497_v2 = vld [vmem:[#allocation8 + $0x420] ss:$8 sps:$4 sm:$0xff]   ;;  %3080 = vmatprep.subr.bf16.mxu0 %v3496_v10 }
0x1564   :  { %2574 = vmatpush1.bf16.msra.mxu1 %v3466_v26  ;;  %v3708_v26 = vmov 7  }
0x1565   :  { %2575 = vmatprep.subr.bf16.mxu1 %v3471_v55  ;;  %3329 = vset.pattern.permute.xlu0 %v3708_v26  ;;  %v3498_v55 = vld [vmem:[#allocation8 + $0x490] ss:$8 sps:$4 sm:$0xff]  }
0x1566   :  { %2651 = vperm.xlu0 %3329, %v4200_v56   ;;  %v2310_v56 = vrot.slane %v2305_v1, %v4134_v43  ;;  %v2630_v1 = vld [vmem:[#allocation10 + $0x15] ss:$8 sm:$0x3] }
0x1568   :  { %2576 = vmatpush1.bf16.msra.mxu1 %v3469_v20  ;;  %v3499_v20 = vld [vmem:[#allocation8 + $0x410] ss:$8 sps:$4 sm:$0xff]  }
0x1569   :  { %2577 = vmatprep.subr.bf16.mxu1 %v3474_v59  ;;  %v3500_v59 = vld [vmem:[#allocation8 + $0x480] ss:$8 sps:$4 sm:$0xff]  }
0x156c   :  { %2578 = vmatpush2.bf16.msra.mxu1 %v3472_v61  ;;  %v2081_v61 = vld [vmem:[#allocation10 + $0x10] ss:$8 sm:$0x3] }
0x156d   :  { %2579 = vmatprep.subr.bf16.mxu1 %v3477_v63  ;;  %v2086_v63 = vrot.slane %v2081_v61, %v4134_v43 }
0x1570   :  { %2580 = vmatpush2.bf16.msra.mxu1 %v3475_v41  ;;  %v2090_v41 = vrot.slane %v2081_v61, %v4162_v23 }
0x1571   :  { %2581 = vmatprep.subr.bf16.mxu1 %v3480_v14 }
0x1574   :  { %2582 = vmatpush2.bf16.msra.mxu1 %v3478_v5 }
0x1575   :  { %2583 = vmatprep.subr.bf16.mxu1 %v3483_v36  ;;  %v3503_v36 = vld [vmem:[#allocation8 + $0x3f0] ss:$8 sps:$4 sm:$0xff]  }
0x1578   :  { %2584 = vmatpush2.bf16.msra.mxu1 %v3481_v51  ;;  %v3504_v51 = vld [vmem:[#allocation8 + $0x460] ss:$8 sps:$4 sm:$0xff]  }
0x1579   :  { %2585 = vmatprep.subr.bf16.mxu1 %v3486_v22  ;;  %v3505_v22 = vld [vmem:[#allocation8 + $0x3e0] ss:$8 sps:$4 sm:$0xff]  }
0x157c   :  { %2586 = vmatpush2.bf16.msra.mxu1 %v3484_v47  ;;  %v3506_v47 = vld [vmem:[#allocation8 + $0x450] ss:$8 sps:$4 sm:$0xff]  }
0x157d   :  { %2587 = vmatprep.subr.bf16.mxu1 %v3489_v54  ;;  %v3507_v54 = vld [vmem:[#allocation8 + $0x3d0] ss:$8 sps:$4 sm:$0xff]  }
0x1580   :  { %2588 = vmatpush2.bf16.msra.mxu1 %v3487_v48  ;;  %v3508_v48 = vld [vmem:[#allocation8 + $0x440] ss:$8 sps:$4 sm:$0xff]  }
0x1581   :  { %2589 = vmatprep.subr.bf16.mxu1 %v3492_v53  ;;  %v3509_v53 = vld [vmem:[#allocation8 + $0x3c0] ss:$8 sps:$4 sm:$0xff]  }
0x1584   :  { %2590 = vmatpush2.bf16.msra.mxu1 %v3490_v9  ;;  %v3510_v9 = vld [vmem:[#allocation8 + $0x430] ss:$8 sps:$4 sm:$0xff]  }
0x1585   :  { %2591 = vmatprep.subr.bf16.mxu1 %v3495_v60  ;;  %v2389_v60 = vld [vmem:[#allocation10 + $0x13] ss:$8 sm:$0x3] }
0x1586   :  { %v2394_v10 = vrot.slane %v2389_v60, %v4134_v43 }
0x1588   :  { %2592 = vmatpush2.bf16.msra.mxu1 %v3493_v19  ;;  %v3511_v19 = vld [vmem:[#allocation8 + $0x3b0] ss:$8 sps:$4 sm:$0xff]  }
0x160b   :  { %v1987_v8 = vpop.f32.mrf.mxu1 }
0x160c   :  { %v1988_v24 = vadd.f32 %v1987_v8, %v1786_v28 }
0x160d   :  { %v1989_v13 = vpop.f32.mrf.mxu1 }
0x160e   :  { %v1990_v34 = vadd.f32 %v1989_v13, %v1790_v39  ;;  %v2009_v31 = vmul.f32 %v2002_v15, %v1988_v24 }
0x160f   :  { %v1991_v30 = vpop.f32.mrf.mxu1 }
0x1610   :  { %v2010_v38 = vmul.f32 %v2006_v11, %v1990_v34  ;;  %v1992_v27 = vadd.f32 %v1991_v30, %v1786_v28  ;;  %v2026_v32 = vadd.f32 %v2019_v37, %v2009_v31 }
0x1611   :  { %v1993_v12 = vpop.f32.mrf.mxu1 }
0x1612   :  { %v2011_v57 = vmul.f32 %v2002_v15, %v1992_v27  ;;  %v2027_v40 = vadd.f32 %v2023_v58, %v2010_v38  ;;  %v1994_v45 = vadd.f32 %v1993_v12, %v1790_v39  ;;  %v2038_v44 = vmul.f32 %v2036_v50, %v2026_v32  ;;  %v2322_v15 = vld [vmem:[#allocation10 + $0x12] ss:$8 sm:$0x3] }
0x1613   :  { %vm2030_vm3 = vcmp.ge.f32.partialorder %v2026_v32, 0.0  ;;  %v2331_v30 = vrot.slane %v2322_v15, %v4162_v23  ;;  %v2327_v38 = vrot.slane %v2322_v15, %v4134_v43  ;;  %v2639_v15 = vrot.slane %v2630_v1, %v4162_v23 }
0x1614   :  { %v2028_v33 = vadd.f32 %v2019_v37, %v2011_v57  ;;  %v2012_v46 = vmul.f32 %v2006_v11, %v1994_v45  ;;  %v2039_v4 = vmul.f32 %v2036_v50, %v2027_v40  ;;  %vm2031_vm2 = vcmp.ge.f32.partialorder %v2027_v40, 0.0 }
0x1615   :  { %v2042_v49 = vsel %vm2030_vm3, %v2026_v32, %v2038_v44 }
0x1616   :  { %v2040_v42 = vmul.f32 %v2036_v50, %v2028_v33  ;;  %vm2032_vm1 = vcmp.ge.f32.partialorder %v2028_v33, 0.0  ;;  %v2029_v52 = vadd.f32 %v2023_v58, %v2012_v46  ;;  %v2043_v3 = vsel %vm2031_vm2, %v2027_v40, %v2039_v4 }
0x1618   :  { %v2041_v62 = vmul.f32 %v2036_v50, %v2029_v52  ;;  %vm2033_vm4 = vcmp.ge.f32.partialorder %v2029_v52, 0.0  ;;  %v2044_v17 = vsel %vm2032_vm1, %v2028_v33, %v2040_v42  ;;  %v2344_v50 = vpop.permute.xlu1 %2343 }
0x1619   :  { %v2046_v35 = vpack.c.bf16 %v2044_v17, %v2042_v49  ;;  %v3501_v49 = vld [vmem:[#allocation8 + $0x400] ss:$8 sps:$4 sm:$0xff]  }
0x161a   :  { %v2045_v21 = vsel %vm2033_vm4, %v2029_v52, %v2041_v62 }
0x161b   :  { %v2047_v0 = vpack.c.bf16 %v2045_v21, %v2043_v3 }
0x161d   :  { %2285 = vmatprep.mubr.bf16.mxu0 %v2047_v0 }
0x161e   :  { %2286 = vmatmul.mubr.bf16.vlgmr.msra.gmra.mxu0 %v2046_v35  ;;  %v3502_v35 = vld [vmem:[#allocation8 + $0x470] ss:$8 sps:$4 sm:$0xff]  }
0x161f   :  { %3081 = vmatpush3.bf16.msra.mxu0 %v3497_v2  ;;  %v2398_v2 = vrot.slane %v2389_v60, %v4162_v23 }
0x1620   :  { %3082 = vmatprep.subr.bf16.mxu0 %v3498_v55 }
0x1623   :  { %3083 = vmatpush3.bf16.msra.mxu0 %v3499_v20  ;;  %v2613_v20 = vld [vmem:[#allocation10 + $0x14] ss:$8 sm:$0x3] }
0x1624   :  { %3084 = vmatprep.subr.bf16.mxu0 %v3500_v59 }
0x1627   :  { %3085 = vmatpush3.bf16.msra.mxu0 %v3501_v49 }
0x1628   :  { %3086 = vmatprep.subr.bf16.mxu0 %v3502_v35 }
0x162b   :  { %3087 = vmatpush3.bf16.msra.mxu0 %v3503_v36 }
0x162c   :  { %3088 = vmatprep.subr.bf16.mxu0 %v3504_v51 }
0x162f   :  { %3089 = vmatpush3.bf16.msra.mxu0 %v3505_v22 }
0x1630   :  { %3090 = vmatprep.subr.bf16.mxu0 %v3506_v47 }
0x1633   :  { %3091 = vmatpush3.bf16.msra.mxu0 %v3507_v54 }
0x1634   :  { %3092 = vmatprep.subr.bf16.mxu0 %v3508_v48 }
0x1637   :  { %3093 = vmatpush3.bf16.msra.mxu0 %v3509_v53 }
0x1638   :  { %3094 = vmatprep.subr.bf16.mxu0 %v3510_v9 }
0x163b   :  { %3095 = vmatpush3.bf16.msra.mxu0 %v3511_v19 }
0x16de   :  { %v2287_v14 = vpop.f32.mrf.mxu0 }
0x16df   :  { %v2288_v5 = vadd.f32 %v2287_v14, %v2086_v63 }
0x16e0   :  { %v2289_v28 = vpop.f32.mrf.mxu0 }
0x16e1   :  { %v2296_v7 = vadd.f32 %v2288_v5, %v4213_v18  ;;  %v2290_v39 = vadd.f32 %v2289_v28, %v2090_v41 }
0x16e2   :  { %v2291_v8 = vpop.f32.mrf.mxu0 }
0x16e3   :  { %v4241_v24 = vmul.f32 0.5, %v2296_v7  ;;  %v2297_v11 = vadd.f32 %v2290_v39, %v4217_v6  ;;  %v2292_v13 = vadd.f32 %v2291_v8, %v2086_v63  ;;  %v2622_v7 = vrot.slane %v2613_v20, %v4162_v23 }
0x16e4   :  { %v2293_v34 = vpop.f32.mrf.mxu0 }
0x16e5   :  { %v4245_v58 = vmul.f32 0.5, %v2297_v11  ;;  %v2298_v31 = vadd.f32 %v2292_v13, %v4223_v25  ;;  %v2294_v18 = vadd.f32 %v2293_v34, %v2090_v41  ;;  %v2317_v37 = vmul.f32 %v2310_v56, %v4241_v24 }
0x16e6   :  { %v2618_v41 = vrot.slane %v2613_v20, %v4134_v43 }
0x16e7   :  { %v2318_v27 = vmul.f32 %v2314_v16, %v4245_v58  ;;  %v4252_v12 = vmul.f32 0.5, %v2298_v31  ;;  %v2299_v6 = vadd.f32 %v2294_v18, %v4226_v29  ;;  %v2334_v32 = vadd.f32 %v2327_v38, %v2317_v37 }
0x16e9   :  { %v2335_v57 = vadd.f32 %v2331_v30, %v2318_v27  ;;  %v2319_v40 = vmul.f32 %v2310_v56, %v4252_v12  ;;  %v4256_v45 = vmul.f32 0.5, %v2299_v6  ;;  %v2346_v52 = vmul.f32 %v2344_v50, %v2334_v32 }
0x16ea   :  { %vm2338_vm7 = vcmp.ge.f32.partialorder %v2334_v32, 0.0 }
0x16eb   :  { %v2336_v33 = vadd.f32 %v2327_v38, %v2319_v40  ;;  %v2320_v25 = vmul.f32 %v2314_v16, %v4256_v45  ;;  %v2347_v42 = vmul.f32 %v2344_v50, %v2335_v57  ;;  %vm2339_vm6 = vcmp.ge.f32.partialorder %v2335_v57, 0.0 }
0x16ec   :  { %v2350_v3 = vsel %vm2338_vm7, %v2334_v32, %v2346_v52  ;;  %v2696_v52 = vld [vmem:[#allocation10 + $0x16] ss:$0 sm:$0xff] }
0x16ed   :  { %v2337_v46 = vadd.f32 %v2331_v30, %v2320_v25  ;;  %vm2340_vm5 = vcmp.ge.f32.partialorder %v2336_v33, 0.0  ;;  %v2348_v4 = vmul.f32 %v2344_v50, %v2336_v33  ;;  %v2351_v62 = vsel %vm2339_vm6, %v2335_v57, %v2347_v42  ;;  %v2652_v57 = vpop.permute.xlu0 %2651 }
0x16ef   :  { %v2349_v44 = vmul.f32 %v2344_v50, %v2337_v46  ;;  %vm2341_vm8 = vcmp.ge.f32.partialorder %v2337_v46, 0.0  ;;  %v2352_v29 = vsel %vm2340_vm5, %v2336_v33, %v2348_v4 }
0x16f0   :  { %v2354_v0 = vpack.c.bf16 %v2352_v29, %v2350_v3 }
0x16f1   :  { %v2353_v17 = vsel %vm2341_vm8, %v2337_v46, %v2349_v44 }
0x16f2   :  { %v2355_v21 = vpack.c.bf16 %v2353_v17, %v2351_v62 }
0x16f4   :  { %2593 = vmatprep.mubr.bf16.mxu1 %v2355_v21 }
0x16f5   :  { %2594 = vmatmul.mubr.bf16.vlgmr.msra.gmra.mxu1 %v2354_v0 }
0x17b5   :  { %v2595_v26 = vpop.f32.mrf.mxu1 }
0x17b6   :  { %v2596_v55 = vadd.f32 %v2595_v26, %v2394_v10 }
0x17b7   :  { %v2597_v59 = vpop.f32.mrf.mxu1 }
0x17b8   :  { %v2604_v61 = vadd.f32 %v2596_v55, %v4241_v24  ;;  %v2598_v63 = vadd.f32 %v2597_v59, %v2398_v2  ;;  %v2635_v24 = vrot.slane %v2630_v1, %v4134_v43 }
0x17b9   :  { %v2599_v14 = vpop.f32.mrf.mxu1 }
0x17ba   :  { %v2608_v5 = vmul.f32 0.5, %v2604_v61  ;;  %v2605_v28 = vadd.f32 %v2598_v63, %v4245_v58  ;;  %v2600_v39 = vadd.f32 %v2599_v14, %v2394_v10 }
0x17bb   :  { %v2601_v56 = vpop.f32.mrf.mxu1 }
0x17bc   :  { %v2609_v8 = vmul.f32 0.5, %v2605_v28  ;;  %v2606_v11 = vadd.f32 %v2600_v39, %v4252_v12  ;;  %v2602_v16 = vadd.f32 %v2601_v56, %v2398_v2  ;;  %v2625_v13 = vmul.f32 %v2618_v41, %v2608_v5 }
0x17be   :  { %v2626_v34 = vmul.f32 %v2622_v7, %v2609_v8  ;;  %v2610_v30 = vmul.f32 0.5, %v2606_v11  ;;  %v2607_v31 = vadd.f32 %v2602_v16, %v4256_v45  ;;  %v2642_v38 = vadd.f32 %v2635_v24, %v2625_v13 }
0x17c0   :  { %v2643_v18 = vadd.f32 %v2639_v15, %v2626_v34  ;;  %v2627_v37 = vmul.f32 %v2618_v41, %v2610_v30  ;;  %v2611_v58 = vmul.f32 0.5, %v2607_v31  ;;  %v2654_v12 = vmul.f32 %v2652_v57, %v2642_v38 }
0x17c1   :  { %vm2646_vm11 = vcmp.ge.f32.partialorder %v2642_v38, 0.0 }
0x17c2   :  { %v2644_v27 = vadd.f32 %v2635_v24, %v2627_v37  ;;  %v2628_v6 = vmul.f32 %v2622_v7, %v2611_v58  ;;  %v2655_v23 = vmul.f32 %v2652_v57, %v2643_v18  ;;  %vm2647_vm10 = vcmp.ge.f32.partialorder %v2643_v18, 0.0 }
0x17c3   :  { %v2658_v45 = vsel %vm2646_vm11, %v2642_v38, %v2654_v12 }
0x17c4   :  { %v2645_v40 = vadd.f32 %v2639_v15, %v2628_v6  ;;  %vm2648_vm9 = vcmp.ge.f32.partialorder %v2644_v27, 0.0  ;;  %v2656_v32 = vmul.f32 %v2652_v57, %v2644_v27  ;;  %v2659_v25 = vsel %vm2647_vm10, %v2643_v18, %v2655_v23 }
0x17c6   :  { %v2657_v33 = vmul.f32 %v2652_v57, %v2645_v40  ;;  %vm2649_vm12 = vcmp.ge.f32.partialorder %v2645_v40, 0.0  ;;  %v2660_v43 = vsel %vm2648_vm9, %v2644_v27, %v2656_v32 }
0x17c7   :  { %v2662_v42 = vpack.c.bf16 %v2660_v43, %v2658_v45 }
0x17c8   :  { %v2661_v50 = vsel %vm2649_vm12, %v2645_v40, %v2657_v33 }
0x17c9   :  { %v2663_v46 = vpack.c.bf16 %v2661_v50, %v2659_v25 }
0x17cb   :  { %2825 = vmatprep.mubr.bf16.mxu0 %v2663_v46 }
0x17cc   :  { %2826 = vmatmul.mubr.bf16.vlgmr.msra.gmra.mxu0 %v2662_v42 }
0x188c   :  { %v3096_v4 = vpop.f32.mrf.mxu0 }
0x188e   :  { %v3097_v44 = vpop.f32.mrf.mxu0 }
0x188f   :  { %v3098_v29 = vadd.f32 %v3097_v44, %v3096_v4 }
0x1890   :  { %v3099_v62 = vpop.f32.mrf.mxu0 }
0x1891   :  { %v2828_v17 = vadd.f32 %v3098_v29, %v2696_v52 }
0x1892   :  { %v3100_v3 = vpop.f32.mrf.mxu0 }
0x1893   :  { %2834 = vst [vmem:[#allocation11] sm:$0xff] %v2828_v17  ;;  %v3101_v21 = vadd.f32 %v3100_v3, %v3099_v62 }
0x1895   :  { %v2831_v0 = vadd.f32 %v3101_v21, %v2696_v52 }
0x1897   :  { %2835 = vst [vmem:[#allocation11 + $0x8] sm:$0xff] %v2831_v0 }
0x1898   :  { %3668 = shalt.err (!%p3665_p1)
}
0x1899   :  { %2847 = dma.vmem_to_hbm [thread:$0]  %s2842_s6, 256, %s4283_s8, [#allocation4], %s3689_s15, %s3689_s15, %s3690_s16  }
0x189a   :  { %3683 = dma.done.wait [#allocation4], 256  }
0x189b   :  { %3684 = vsyncadd [#allocation4], 4294967040 }
0x189c   :  { %2851 = vsyncpa [#allocation3], 1 }
0x189d   :  { %2852 = vsyncpa [#allocation6], 1 }
0x189e   :  { %2853 = vsyncpa [#allocation9], 1 }
0x189f   :  { %2854 = vsyncpa [#allocation4], 1 }

</bundles_post_ra>
